<compile_context>
chip_gen: v6e
topology: v6e:2x2x1
jax: 0.10.0
libtpu: 0.0.40
codegen_flags: <defaults>
</compile_context>

<pallas_src>
import numpy as np
import jax
import jax.numpy as jnp
from jax.experimental import pallas as pl
from jax.experimental.pallas import tpu as pltpu

# AdaptiveLIF defaults
RM, DT, B0, BETA = 1.0, 1.0, 0.2, 1.8


# ----------------------------------------------------------------------------
# Pallas kernel
# ----------------------------------------------------------------------------
def _drsnn_kernel(x_ref, w_in_ref, b_in_ref, w_hh_ref, b_hh_ref,
                  w_fc_ref, b_fc_ref, a1_ref, r1_ref, a2_ref, r2_ref,
                  out_ref,
                  vin_ref, hsl_ref, hist_ref, opre_ref,
                  u1_ref, eta1_ref, u2_ref, eta2_ref):
    T, Bp, Cp = out_ref.shape
    TMAX = w_fc_ref.shape[0]
    Hp = w_fc_ref.shape[1]
    Dp = w_in_ref.shape[1]
    f32, bf16 = jnp.float32, jnp.bfloat16

    # ---- all_reset(): zero membranes, eta = b0, clear spike history ---------
    u1_ref[...] = jnp.zeros_like(u1_ref)
    eta1_ref[...] = jnp.full_like(eta1_ref, B0)
    u2_ref[...] = jnp.zeros_like(u2_ref)
    eta2_ref[...] = jnp.full_like(eta2_ref, B0)
    hist_ref[...] = jnp.zeros_like(hist_ref)
    if TMAX > 1:
        hsl_ref[0:TMAX - 1, :, :] = jnp.zeros((TMAX - 1, Bp, Hp), f32)

    # ---- phase 1: hoisted input delayed-conv (no recurrence) ----------------
    # v_in[t] = b_in + [t>=1]*b_hh + sum_d x[t-d] @ Weff_in[d]
    vin_ref[...] = jnp.broadcast_to(b_in_ref[...][None], (T, Bp, Hp))
    if T > 1:
        vin_ref[1:, :, :] += jnp.broadcast_to(b_hh_ref[...][None], (T - 1, Bp, Hp))
    for d in range(TMAX):
        xd = x_ref[TMAX - 1 - d: TMAX - 1 - d + T]            # (T, Bp, Dp) = x[t-d]
        prod = jnp.dot(xd.reshape(T * Bp, Dp).astype(bf16), w_in_ref[d],
                       preferred_element_type=f32)
        vin_ref[...] += prod.reshape(T, Bp, Hp)

    # ---- phase 2: recurrent scan (sparse_hh + hidden AdaptiveLIF) -----------
    a1 = a1_ref[...]
    r1 = r1_ref[...]
    om_a1 = 1.0 - a1
    om_r1 = 1.0 - r1

    @pl.loop(0, T)
    def _(t):
        # hist lanes = [h[t-1] | h[t-2] | ... | h[t-TMAX]]  -> one K=TMAX*Hp matmul
        vh = jnp.dot(hist_ref[...].astype(bf16), w_hh_ref[...],
                     preferred_element_type=f32)
        v = vin_ref[t] + vh
        eta = eta1_ref[...]
        u = u1_ref[...] * a1 + om_a1 * RM * v
        h = (u - (B0 + BETA * eta) > 0.0).astype(f32)          # surrogate fwd = Heaviside
        u1_ref[...] = u - h * (eta * BETA + B0)
        eta1_ref[...] = r1 * eta + om_r1 * h
        hsl_ref[t + TMAX - 1] = h                              # time-padded spike slab
        if TMAX > 1:
            hist_ref[...] = jnp.concatenate(
                [h, hist_ref[:, : (TMAX - 1) * Hp]], axis=1)   # shift delay blocks
        else:
            hist_ref[...] = h

    # ---- phase 3: hoisted output delayed-conv over all hidden spikes --------
    opre_ref[...] = jnp.broadcast_to(b_fc_ref[...][None], (T, Bp, Cp))
    for d in range(TMAX):
        hd = hsl_ref[TMAX - 1 - d: TMAX - 1 - d + T]           # (T, Bp, Hp) = h[t-d]
        prod = jnp.dot(hd.reshape(T * Bp, Hp).astype(bf16), w_fc_ref[d],
                       preferred_element_type=f32)
        opre_ref[...] += prod.reshape(T, Bp, Cp)

    # ---- phase 4: output AdaptiveLIF (elementwise scan, VPU only) -----------
    a2 = a2_ref[...]
    r2 = r2_ref[...]
    om_a2 = 1.0 - a2
    om_r2 = 1.0 - r2

    @pl.loop(0, T)
    def _(t):
        o = opre_ref[t]
        eta = eta2_ref[...]
        u = u2_ref[...] * a2 + om_a2 * RM * o
        s = (u - (B0 + BETA * eta) > 0.0).astype(f32)
        u2_ref[...] = u - s * (eta * BETA + B0)
        eta2_ref[...] = r2 * eta + om_r2 * s
        out_ref[t] = s                                          # (8, 128) lane-dense store


# ----------------------------------------------------------------------------
# Wrapper: padding, layout, pallas_call
# ----------------------------------------------------------------------------
def _round_up(n, m):
    return ((n + m - 1) // m) * m


@jax.jit
def drsnn_forward(x, w_in, b_in, w_hh, b_hh, w_fc, b_fc, a1, r1, a2, r2):
    # x: (B, T, Din); w_*: (t_max, in, out) effective weights; b_*: (out,); a/r: (1, out)
    B, T, Din = x.shape
    TMAX, _, H = w_in.shape
    C = w_fc.shape[2]
    B_BLK = 8
    Bp = _round_up(B, B_BLK)
    Dp = _round_up(Din, 128)
    Hp = _round_up(H, 128)
    Cp = _round_up(C, 128)
    Tx = T + TMAX - 1

    # time-major, zero-padded (batch -> sublanes, feature -> lanes, t_max-1 lead pad)
    xt = jnp.transpose(x, (1, 0, 2)).astype(jnp.float32)
    xt = jnp.pad(xt, ((TMAX - 1, 0), (0, Bp - B), (0, Dp - Din)))

    w_in_p = jnp.pad(w_in, ((0, 0), (0, Dp - Din), (0, Hp - H))).astype(jnp.bfloat16)
    w_hh_p = jnp.pad(w_hh, ((0, 0), (0, Hp - H), (0, Hp - H))
                     ).astype(jnp.bfloat16).reshape(TMAX * Hp, Hp)
    w_fc_p = jnp.pad(w_fc, ((0, 0), (0, Hp - H), (0, Cp - C))).astype(jnp.bfloat16)

    b_in_p = jnp.pad(b_in.reshape(1, -1).astype(jnp.float32), ((0, 0), (0, Hp - H)))
    b_hh_p = jnp.pad(b_hh.reshape(1, -1).astype(jnp.float32), ((0, 0), (0, Hp - H)))
    b_fc_p = jnp.pad(b_fc.reshape(1, -1).astype(jnp.float32), ((0, 0), (0, Cp - C)))

    # pad decay factors with 1.0 -> padded units never integrate and never spike
    def pad_decay(a, P):
        a = a.astype(jnp.float32)
        return jnp.pad(a, ((0, 0), (0, P - a.shape[1])), constant_values=1.0)

    a1_p, r1_p = pad_decay(a1, Hp), pad_decay(r1, Hp)
    a2_p, r2_p = pad_decay(a2, Cp), pad_decay(r2, Cp)

    grid_spec = pltpu.PrefetchScalarGridSpec(
        num_scalar_prefetch=0,
        grid=(Bp // B_BLK,),
        in_specs=[
            pl.BlockSpec((Tx, B_BLK, Dp), lambda b: (0, b, 0)),        # x
            pl.BlockSpec((TMAX, Dp, Hp), lambda b: (0, 0, 0)),         # Weff_in
            pl.BlockSpec((1, Hp), lambda b: (0, 0)),                   # b_in
            pl.BlockSpec((TMAX * Hp, Hp), lambda b: (0, 0)),           # Weff_hh (flat)
            pl.BlockSpec((1, Hp), lambda b: (0, 0)),                   # b_hh
            pl.BlockSpec((TMAX, Hp, Cp), lambda b: (0, 0, 0)),         # Weff_fc
            pl.BlockSpec((1, Cp), lambda b: (0, 0)),                   # b_fc
            pl.BlockSpec((1, Hp), lambda b: (0, 0)),                   # alpha1
            pl.BlockSpec((1, Hp), lambda b: (0, 0)),                   # rho1
            pl.BlockSpec((1, Cp), lambda b: (0, 0)),                   # alpha2
            pl.BlockSpec((1, Cp), lambda b: (0, 0)),                   # rho2
        ],
        out_specs=pl.BlockSpec((T, B_BLK, Cp), lambda b: (0, b, 0)),
        scratch_shapes=[
            pltpu.VMEM((T, B_BLK, Hp), jnp.float32),            # v_in slab
            pltpu.VMEM((Tx, B_BLK, Hp), jnp.float32),           # hidden-spike slab (padded)
            pltpu.VMEM((B_BLK, TMAX * Hp), jnp.float32),        # delay-stacked spike hist
            pltpu.VMEM((T, B_BLK, Cp), jnp.float32),            # o_pre slab
            pltpu.VMEM((B_BLK, Hp), jnp.float32),               # u1
            pltpu.VMEM((B_BLK, Hp), jnp.float32),               # eta1
            pltpu.VMEM((B_BLK, Cp), jnp.float32),               # u2
            pltpu.VMEM((B_BLK, Cp), jnp.float32),               # eta2
        ],
    )

    out = pl.pallas_call(
        _drsnn_kernel,
        out_shape=jax.ShapeDtypeStruct((T, Bp, Cp), jnp.float32),
        grid_spec=grid_spec,
        compiler_params=pltpu.CompilerParams(
            dimension_semantics=("parallel",)),      # batch blocks -> megacore on v7x
    )(xt, w_in_p, b_in_p, w_hh_p, b_hh_p, w_fc_p, b_fc_p, a1_p, r1_p, a2_p, r2_p)

    return jnp.transpose(out[:, :B, :C], (1, 0, 2))             # (B, T, C)


# ----------------------------------------------------------------------------
# Deterministic parameter construction (matches the PyTorch __init__ shapes)
# ----------------------------------------------------------------------------
def make_delayed_synapse(kw, kb, kd, in_f, out_f, t_max, sparsity, zero_weight=False):
    bound = 1.0 / np.sqrt(in_f)
    if zero_weight:        # delayed_recurrent_block zeros sparse_hh.weight
        W = jnp.zeros((out_f, in_f), jnp.float32)
    else:
        W = jax.random.uniform(kw, (out_f, in_f), jnp.float32, -bound, bound)
        # keep weights bf16-representable so the bf16 MXU path is bit-consistent
        W = W.astype(jnp.bfloat16).astype(jnp.float32)
    b = jax.random.uniform(kb, (out_f,), jnp.float32, -bound, bound)
    pcnt = jnp.percentile(jnp.abs(W), 100.0 * (1.0 - sparsity))
    mask = (jnp.abs(W) >= pcnt).astype(jnp.float32)
    delay = jax.random.randint(kd, (in_f, out_f), 0, t_max)
    DW = (delay[None, :, :] == jnp.arange(t_max)[:, None, None]).astype(jnp.float32)
    Weff = DW * ((W * mask).T)[None]          # (t_max, in_f, out_f)
    return dict(W=W, b=b, mask=mask, DW=DW, Weff=Weff)


def make_lif(km, ka, size):
    tau_m = 200.0 + 25.0 * jax.random.normal(km, (size,), jnp.float32)
    tau_adp = 20.0 + 5.0 * jax.random.normal(ka, (size,), jnp.float32)
    return dict(alpha=jnp.exp(-DT / tau_m).reshape(1, size),
                rho=jnp.exp(-DT / tau_adp).reshape(1, size))


# ----------------------------------------------------------------------------
# Pure numpy reference mimicking the PyTorch module step-for-step
# ----------------------------------------------------------------------------
def ref_drsnn(x, syn_in, syn_hh, syn_fc, a1, r1, a2, r2, T, t_max):
    x = np.asarray(x, np.float32)
    B = x.shape[0]

    def np_syn(p):
        return {k: np.asarray(p[k]) for k in ("W", "b", "mask", "DW")}

    s_in, s_hh, s_fc = np_syn(syn_in), np_syn(syn_hh), np_syn(syn_fc)
    for p in (s_in, s_hh, s_fc):
        out_f, in_f = p["W"].shape
        p["buf"] = [np.zeros((B, in_f, out_f), np.float32) for _ in range(T)]
        p["cur"] = 0

    def syn_step(p, inp):
        delayed = inp[:, None, :, None] * p["DW"][None]       # (B, t_max, in, out)
        cur = p["cur"]
        for i in range(t_max):
            if cur + i >= T:
                break
            p["buf"][cur + i] = p["buf"][cur + i] + delayed[:, i]
        Wm = (p["W"] * p["mask"]).T                           # weight.t() * mask.t()
        out = (p["buf"][cur] * Wm[None]).sum(axis=1) + p["b"][None]
        p["cur"] += 1
        return out

    a1, r1, a2, r2 = (np.asarray(v, np.float32) for v in (a1, r1, a2, r2))
    l1 = {"u": 0.0, "eta": B0}
    l2 = {"u": 0.0, "eta": B0}

    def lif_step(st, inp, alpha, rho):
        u = st["u"] * alpha + (1.0 - alpha) * RM * inp
        vth = B0 + BETA * st["eta"]
        s = (u - vth > 0.0).astype(np.float32)
        st["u"] = u - s * (st["eta"] * BETA + B0)
        st["eta"] = rho * st["eta"] + (1.0 - rho) * s
        return s

    outs = []
    h_last = None
    for t in range(T):
        v = syn_step(s_in, x[:, t])
        if t >= 1:                               # h_last is not 0
            v = v + syn_step(s_hh, h_last)
        h_last = lif_step(l1, v, a1, r1)
        o = syn_step(s_fc, h_last)
        outs.append(lif_step(l2, o, a2, r2))
    return np.stack(outs, axis=1)


# ----------------------------------------------------------------------------
if __name__ == "__main__":
    B, T, Din, H, C, t_max, sparsity = 2, 8, 16, 32, 10, 4, 0.3

    key = jax.random.PRNGKey(0)
    keys = jax.random.split(key, 14)
    # scale so the slow LIF (tau_m ~ 200) actually fires; keep x bf16-representable
    x = 150.0 * jax.random.normal(keys[0], (B, T, Din), jnp.float32)
    x = x.astype(jnp.bfloat16).astype(jnp.float32)

    syn_in = make_delayed_synapse(keys[1], keys[2], keys[3], Din, H, t_max, sparsity)
    syn_hh = make_delayed_synapse(keys[4], keys[5], keys[6], H, H, t_max, sparsity,
                                  zero_weight=True)   # nn.init.zeros_(sparse_hh.weight)
    syn_fc = make_delayed_synapse(keys[7], keys[8], keys[9], H, C, t_max, sparsity)
    lif1 = make_lif(keys[10], keys[11], H)
    lif2 = make_lif(keys[12], keys[13], C)

    def run_and_check(s_hh):
        out = drsnn_forward(x,
                            syn_in["Weff"], syn_in["b"],
                            s_hh["Weff"], s_hh["b"],
                            syn_fc["Weff"], syn_fc["b"],
                            lif1["alpha"], lif1["rho"],
                            lif2["alpha"], lif2["rho"])
        out = jax.block_until_ready(out)
        ref = ref_drsnn(x, syn_in, s_hh, syn_fc,
                        lif1["alpha"], lif1["rho"], lif2["alpha"], lif2["rho"],
                        T, t_max)
        np.testing.assert_allclose(np.asarray(out), ref, atol=1e-5)

    # 1) faithful to the module's init (recurrent weight zeroed)
    run_and_check(syn_hh)
    # 2) non-zero recurrent weights to exercise the fused sparse_hh matmul path
    syn_hh_nz = make_delayed_synapse(keys[4], keys[5], keys[6], H, H, t_max, sparsity)
    run_and_check(syn_hh_nz)

    print("KERNEL_OK")
</pallas_src>

<mosaic_0001>
module attributes {stable_mosaic.version = 11 : i64} {
  func.func @_drsnn_kernel(%arg0: i32, %arg1: memref<11x8x128xf32, #tpu.memory_space<vmem>>, %arg2: memref<4x128x128xbf16, #tpu.memory_space<vmem>>, %arg3: memref<1x128xf32, #tpu.memory_space<vmem>>, %arg4: memref<512x128xbf16, #tpu.memory_space<vmem>>, %arg5: memref<1x128xf32, #tpu.memory_space<vmem>>, %arg6: memref<4x128x128xbf16, #tpu.memory_space<vmem>>, %arg7: memref<1x128xf32, #tpu.memory_space<vmem>>, %arg8: memref<1x128xf32, #tpu.memory_space<vmem>>, %arg9: memref<1x128xf32, #tpu.memory_space<vmem>>, %arg10: memref<1x128xf32, #tpu.memory_space<vmem>>, %arg11: memref<1x128xf32, #tpu.memory_space<vmem>>, %arg12: memref<8x8x128xf32, #tpu.memory_space<vmem>>, %arg13: memref<8x8x128xf32, #tpu.memory_space<vmem>>, %arg14: memref<11x8x128xf32, #tpu.memory_space<vmem>>, %arg15: memref<8x512xf32, #tpu.memory_space<vmem>>, %arg16: memref<8x8x128xf32, #tpu.memory_space<vmem>>, %arg17: memref<8x128xf32, #tpu.memory_space<vmem>>, %arg18: memref<8x128xf32, #tpu.memory_space<vmem>>, %arg19: memref<8x128xf32, #tpu.memory_space<vmem>>, %arg20: memref<8x128xf32, #tpu.memory_space<vmem>>) attributes {dimension_semantics = [#tpu.dimension_semantics<parallel>], iteration_bounds = array<i64: 1>, scalar_prefetch = 0 : i64, scratch_operands = 8 : i64, tpu.core_type = #tpu.core_type<tc>, window_params = [{transform_indices = @transform_0, window_bounds = array<i64: 11, 8, 128>}, {pipeline_mode = #tpu.pipeline_mode<synchronous>, transform_indices = @transform_1, window_bounds = array<i64: 4, 128, 128>}, {pipeline_mode = #tpu.pipeline_mode<synchronous>, transform_indices = @transform_2, window_bounds = array<i64: 1, 128>}, {pipeline_mode = #tpu.pipeline_mode<synchronous>, transform_indices = @transform_3, window_bounds = array<i64: 512, 128>}, {pipeline_mode = #tpu.pipeline_mode<synchronous>, transform_indices = @transform_4, window_bounds = array<i64: 1, 128>}, {pipeline_mode = #tpu.pipeline_mode<synchronous>, transform_indices = @transform_5, window_bounds = array<i64: 4, 128, 128>}, {pipeline_mode = #tpu.pipeline_mode<synchronous>, transform_indices = @transform_6, window_bounds = array<i64: 1, 128>}, {pipeline_mode = #tpu.pipeline_mode<synchronous>, transform_indices = @transform_7, window_bounds = array<i64: 1, 128>}, {pipeline_mode = #tpu.pipeline_mode<synchronous>, transform_indices = @transform_8, window_bounds = array<i64: 1, 128>}, {pipeline_mode = #tpu.pipeline_mode<synchronous>, transform_indices = @transform_9, window_bounds = array<i64: 1, 128>}, {pipeline_mode = #tpu.pipeline_mode<synchronous>, transform_indices = @transform_10, window_bounds = array<i64: 1, 128>}, {transform_indices = @transform_11, window_bounds = array<i64: 8, 8, 128>}]} {
    %cst = arith.constant 0.000000e+00 : f32
    %0 = vector.broadcast %cst : f32 to vector<8x128xf32>
    %c0 = arith.constant 0 : index
    %c0_0 = arith.constant 0 : index
    %1 = vector.load %arg17[%c0, %c0_0] : memref<8x128xf32, #tpu.memory_space<vmem>>, vector<8x128xf32>
    tpu.vector_store %arg17[%c0, %c0_0], %0 {strides = array<i32>} : memref<8x128xf32, #tpu.memory_space<vmem>>, vector<8x128xf32>,
    %cst_1 = arith.constant 2.000000e-01 : f32
    %2 = vector.broadcast %cst_1 : f32 to vector<8x128xf32>
    %c0_2 = arith.constant 0 : index
    %c0_3 = arith.constant 0 : index
    %3 = vector.load %arg18[%c0_2, %c0_3] : memref<8x128xf32, #tpu.memory_space<vmem>>, vector<8x128xf32>
    tpu.vector_store %arg18[%c0_2, %c0_3], %2 {strides = array<i32>} : memref<8x128xf32, #tpu.memory_space<vmem>>, vector<8x128xf32>,
    %cst_4 = arith.constant 0.000000e+00 : f32
    %4 = vector.broadcast %cst_4 : f32 to vector<8x128xf32>
    %c0_5 = arith.constant 0 : index
    %c0_6 = arith.constant 0 : index
    %5 = vector.load %arg19[%c0_5, %c0_6] : memref<8x128xf32, #tpu.memory_space<vmem>>, vector<8x128xf32>
    tpu.vector_store %arg19[%c0_5, %c0_6], %4 {strides = array<i32>} : memref<8x128xf32, #tpu.memory_space<vmem>>, vector<8x128xf32>,
    %cst_7 = arith.constant 2.000000e-01 : f32
    %6 = vector.broadcast %cst_7 : f32 to vector<8x128xf32>
    %c0_8 = arith.constant 0 : index
    %c0_9 = arith.constant 0 : index
    %7 = vector.load %arg20[%c0_8, %c0_9] : memref<8x128xf32, #tpu.memory_space<vmem>>, vector<8x128xf32>
    tpu.vector_store %arg20[%c0_8, %c0_9], %6 {strides = array<i32>} : memref<8x128xf32, #tpu.memory_space<vmem>>, vector<8x128xf32>,
    %cst_10 = arith.constant 0.000000e+00 : f32
    %8 = vector.broadcast %cst_10 : f32 to vector<8x512xf32>
    %c0_11 = arith.constant 0 : index
    %c0_12 = arith.constant 0 : index
    %9 = vector.load %arg15[%c0_11, %c0_12] : memref<8x512xf32, #tpu.memory_space<vmem>>, vector<8x512xf32>
    tpu.vector_store %arg15[%c0_11, %c0_12], %8 {strides = array<i32>} : memref<8x512xf32, #tpu.memory_space<vmem>>, vector<8x512xf32>,
    %cst_13 = arith.constant 0.000000e+00 : f32
    %10 = vector.broadcast %cst_13 : f32 to vector<3x8x128xf32>
    %c0_14 = arith.constant 0 : index
    %c0_15 = arith.constant 0 : index
    %c0_16 = arith.constant 0 : index
    %11 = vector.load %arg14[%c0_14, %c0_15, %c0_16] : memref<11x8x128xf32, #tpu.memory_space<vmem>>, vector<3x8x128xf32>
    tpu.vector_store %arg14[%c0_14, %c0_15, %c0_16], %10 {strides = array<i32>} : memref<11x8x128xf32, #tpu.memory_space<vmem>>, vector<3x8x128xf32>,
    %c0_17 = arith.constant 0 : index
    %c0_18 = arith.constant 0 : index
    %12 = vector.load %arg3[%c0_17, %c0_18] : memref<1x128xf32, #tpu.memory_space<vmem>>, vector<1x128xf32>
    %13 = vector.shape_cast %12 : vector<1x128xf32> to vector<1x1x128xf32>
    %14 = vector.shape_cast %13 : vector<1x1x128xf32> to vector<1x1x128xf32>
    %15 = vector.broadcast %14 : vector<1x1x128xf32> to vector<8x8x128xf32>
    %c0_19 = arith.constant 0 : index
    %c0_20 = arith.constant 0 : index
    %c0_21 = arith.constant 0 : index
    %16 = vector.load %arg13[%c0_19, %c0_20, %c0_21] : memref<8x8x128xf32, #tpu.memory_space<vmem>>, vector<8x8x128xf32>
    tpu.vector_store %arg13[%c0_19, %c0_20, %c0_21], %15 {strides = array<i32>} : memref<8x8x128xf32, #tpu.memory_space<vmem>>, vector<8x8x128xf32>,
    %c1 = arith.constant 1 : index
    %c0_22 = arith.constant 0 : index
    %c0_23 = arith.constant 0 : index
    %17 = vector.load %arg13[%c1, %c0_22, %c0_23] : memref<8x8x128xf32, #tpu.memory_space<vmem>>, vector<7x8x128xf32>
    %c0_24 = arith.constant 0 : index
    %c0_25 = arith.constant 0 : index
    %18 = vector.load %arg5[%c0_24, %c0_25] : memref<1x128xf32, #tpu.memory_space<vmem>>, vector<1x128xf32>
    %19 = vector.shape_cast %18 : vector<1x128xf32> to vector<1x1x128xf32>
    %20 = vector.shape_cast %19 : vector<1x1x128xf32> to vector<1x1x128xf32>
    %21 = vector.broadcast %20 : vector<1x1x128xf32> to vector<7x8x128xf32>
    %22 = arith.addf %17, %21 : vector<7x8x128xf32>
    %c1_26 = arith.constant 1 : index
    %c0_27 = arith.constant 0 : index
    %c0_28 = arith.constant 0 : index
    %23 = vector.load %arg13[%c1_26, %c0_27, %c0_28] : memref<8x8x128xf32, #tpu.memory_space<vmem>>, vector<7x8x128xf32>
    tpu.vector_store %arg13[%c1_26, %c0_27, %c0_28], %22 {strides = array<i32>} : memref<8x8x128xf32, #tpu.memory_space<vmem>>, vector<7x8x128xf32>,
    %c3 = arith.constant 3 : index
    %c0_29 = arith.constant 0 : index
    %c0_30 = arith.constant 0 : index
    %24 = vector.load %arg1[%c3, %c0_29, %c0_30] : memref<11x8x128xf32, #tpu.memory_space<vmem>>, vector<8x8x128xf32>
    %25 = vector.shape_cast %24 : vector<8x8x128xf32> to vector<64x128xf32>
    %26 = arith.truncf %25 : vector<64x128xf32> to vector<64x128xbf16>
    %c0_31 = arith.constant 0 : index
    %c0_32 = arith.constant 0 : index
    %c0_33 = arith.constant 0 : index
    %27 = vector.load %arg2[%c0_31, %c0_32, %c0_33] : memref<4x128x128xbf16, #tpu.memory_space<vmem>>, vector<1x128x128xbf16>
    %28 = vector.shape_cast %27 : vector<1x128x128xbf16> to vector<128x128xbf16>
    %cst_34 = arith.constant dense<0.000000e+00> : vector<64x128xf32>
    %29 = tpu.matmul %26, %28, %cst_34 {dimension_numbers = #tpu.dot_dimension_numbers<[1], [0], [0], [1], [0, 0, 1, 1], [], []>} : vector<64x128xbf16>, vector<128x128xbf16>, vector<64x128xf32> -> vector<64x128xf32>
    %c0_35 = arith.constant 0 : index
    %c0_36 = arith.constant 0 : index
    %c0_37 = arith.constant 0 : index
    %30 = vector.load %arg13[%c0_35, %c0_36, %c0_37] : memref<8x8x128xf32, #tpu.memory_space<vmem>>, vector<8x8x128xf32>
    %31 = vector.shape_cast %29 : vector<64x128xf32> to vector<8x8x128xf32>
    %32 = arith.addf %30, %31 : vector<8x8x128xf32>
    %c0_38 = arith.constant 0 : index
    %c0_39 = arith.constant 0 : index
    %c0_40 = arith.constant 0 : index
    %33 = vector.load %arg13[%c0_38, %c0_39, %c0_40] : memref<8x8x128xf32, #tpu.memory_space<vmem>>, vector<8x8x128xf32>
    tpu.vector_store %arg13[%c0_38, %c0_39, %c0_40], %32 {strides = array<i32>} : memref<8x8x128xf32, #tpu.memory_space<vmem>>, vector<8x8x128xf32>,
    %c2 = arith.constant 2 : index
    %c0_41 = arith.constant 0 : index
    %c0_42 = arith.constant 0 : index
    %34 = vector.load %arg1[%c2, %c0_41, %c0_42] : memref<11x8x128xf32, #tpu.memory_space<vmem>>, vector<8x8x128xf32>
    %35 = vector.shape_cast %34 : vector<8x8x128xf32> to vector<64x128xf32>
    %36 = arith.truncf %35 : vector<64x128xf32> to vector<64x128xbf16>
    %c1_43 = arith.constant 1 : index
    %c0_44 = arith.constant 0 : index
    %c0_45 = arith.constant 0 : index
    %37 = vector.load %arg2[%c1_43, %c0_44, %c0_45] : memref<4x128x128xbf16, #tpu.memory_space<vmem>>, vector<1x128x128xbf16>
    %38 = vector.shape_cast %37 : vector<1x128x128xbf16> to vector<128x128xbf16>
    %cst_46 = arith.constant dense<0.000000e+00> : vector<64x128xf32>
    %39 = tpu.matmul %36, %38, %cst_46 {dimension_numbers = #tpu.dot_dimension_numbers<[1], [0], [0], [1], [0, 0, 1, 1], [], []>} : vector<64x128xbf16>, vector<128x128xbf16>, vector<64x128xf32> -> vector<64x128xf32>
    %c0_47 = arith.constant 0 : index
    %c0_48 = arith.constant 0 : index
    %c0_49 = arith.constant 0 : index
    %40 = vector.load %arg13[%c0_47, %c0_48, %c0_49] : memref<8x8x128xf32, #tpu.memory_space<vmem>>, vector<8x8x128xf32>
    %41 = vector.shape_cast %39 : vector<64x128xf32> to vector<8x8x128xf32>
    %42 = arith.addf %40, %41 : vector<8x8x128xf32>
    %c0_50 = arith.constant 0 : index
    %c0_51 = arith.constant 0 : index
    %c0_52 = arith.constant 0 : index
    %43 = vector.load %arg13[%c0_50, %c0_51, %c0_52] : memref<8x8x128xf32, #tpu.memory_space<vmem>>, vector<8x8x128xf32>
    tpu.vector_store %arg13[%c0_50, %c0_51, %c0_52], %42 {strides = array<i32>} : memref<8x8x128xf32, #tpu.memory_space<vmem>>, vector<8x8x128xf32>,
    %c1_53 = arith.constant 1 : index
    %c0_54 = arith.constant 0 : index
    %c0_55 = arith.constant 0 : index
    %44 = vector.load %arg1[%c1_53, %c0_54, %c0_55] : memref<11x8x128xf32, #tpu.memory_space<vmem>>, vector<8x8x128xf32>
    %45 = vector.shape_cast %44 : vector<8x8x128xf32> to vector<64x128xf32>
    %46 = arith.truncf %45 : vector<64x128xf32> to vector<64x128xbf16>
    %c2_56 = arith.constant 2 : index
    %c0_57 = arith.constant 0 : index
    %c0_58 = arith.constant 0 : index
    %47 = vector.load %arg2[%c2_56, %c0_57, %c0_58] : memref<4x128x128xbf16, #tpu.memory_space<vmem>>, vector<1x128x128xbf16>
    %48 = vector.shape_cast %47 : vector<1x128x128xbf16> to vector<128x128xbf16>
    %cst_59 = arith.constant dense<0.000000e+00> : vector<64x128xf32>
    %49 = tpu.matmul %46, %48, %cst_59 {dimension_numbers = #tpu.dot_dimension_numbers<[1], [0], [0], [1], [0, 0, 1, 1], [], []>} : vector<64x128xbf16>, vector<128x128xbf16>, vector<64x128xf32> -> vector<64x128xf32>
    %c0_60 = arith.constant 0 : index
    %c0_61 = arith.constant 0 : index
    %c0_62 = arith.constant 0 : index
    %50 = vector.load %arg13[%c0_60, %c0_61, %c0_62] : memref<8x8x128xf32, #tpu.memory_space<vmem>>, vector<8x8x128xf32>
    %51 = vector.shape_cast %49 : vector<64x128xf32> to vector<8x8x128xf32>
    %52 = arith.addf %50, %51 : vector<8x8x128xf32>
    %c0_63 = arith.constant 0 : index
    %c0_64 = arith.constant 0 : index
    %c0_65 = arith.constant 0 : index
    %53 = vector.load %arg13[%c0_63, %c0_64, %c0_65] : memref<8x8x128xf32, #tpu.memory_space<vmem>>, vector<8x8x128xf32>
    tpu.vector_store %arg13[%c0_63, %c0_64, %c0_65], %52 {strides = array<i32>} : memref<8x8x128xf32, #tpu.memory_space<vmem>>, vector<8x8x128xf32>,
    %c0_66 = arith.constant 0 : index
    %c0_67 = arith.constant 0 : index
    %c0_68 = arith.constant 0 : index
    %54 = vector.load %arg1[%c0_66, %c0_67, %c0_68] : memref<11x8x128xf32, #tpu.memory_space<vmem>>, vector<8x8x128xf32>
    %55 = vector.shape_cast %54 : vector<8x8x128xf32> to vector<64x128xf32>
    %56 = arith.truncf %55 : vector<64x128xf32> to vector<64x128xbf16>
    %c3_69 = arith.constant 3 : index
    %c0_70 = arith.constant 0 : index
    %c0_71 = arith.constant 0 : index
    %57 = vector.load %arg2[%c3_69, %c0_70, %c0_71] : memref<4x128x128xbf16, #tpu.memory_space<vmem>>, vector<1x128x128xbf16>
    %58 = vector.shape_cast %57 : vector<1x128x128xbf16> to vector<128x128xbf16>
    %cst_72 = arith.constant dense<0.000000e+00> : vector<64x128xf32>
    %59 = tpu.matmul %56, %58, %cst_72 {dimension_numbers = #tpu.dot_dimension_numbers<[1], [0], [0], [1], [0, 0, 1, 1], [], []>} : vector<64x128xbf16>, vector<128x128xbf16>, vector<64x128xf32> -> vector<64x128xf32>
    %c0_73 = arith.constant 0 : index
    %c0_74 = arith.constant 0 : index
    %c0_75 = arith.constant 0 : index
    %60 = vector.load %arg13[%c0_73, %c0_74, %c0_75] : memref<8x8x128xf32, #tpu.memory_space<vmem>>, vector<8x8x128xf32>
    %61 = vector.shape_cast %59 : vector<64x128xf32> to vector<8x8x128xf32>
    %62 = arith.addf %60, %61 : vector<8x8x128xf32>
    %c0_76 = arith.constant 0 : index
    %c0_77 = arith.constant 0 : index
    %c0_78 = arith.constant 0 : index
    %63 = vector.load %arg13[%c0_76, %c0_77, %c0_78] : memref<8x8x128xf32, #tpu.memory_space<vmem>>, vector<8x8x128xf32>
    tpu.vector_store %arg13[%c0_76, %c0_77, %c0_78], %62 {strides = array<i32>} : memref<8x8x128xf32, #tpu.memory_space<vmem>>, vector<8x8x128xf32>,
    %c0_79 = arith.constant 0 : index
    %c0_80 = arith.constant 0 : index
    %64 = vector.load %arg8[%c0_79, %c0_80] : memref<1x128xf32, #tpu.memory_space<vmem>>, vector<1x128xf32>
    %c0_81 = arith.constant 0 : index
    %c0_82 = arith.constant 0 : index
    %65 = vector.load %arg9[%c0_81, %c0_82] : memref<1x128xf32, #tpu.memory_space<vmem>>, vector<1x128xf32>
    %cst_83 = arith.constant 1.000000e+00 : f32
    %66 = vector.broadcast %cst_83 : f32 to vector<1x128xf32>
    %67 = arith.subf %66, %64 : vector<1x128xf32>
    %cst_84 = arith.constant 1.000000e+00 : f32
    %68 = vector.broadcast %cst_84 : f32 to vector<1x128xf32>
    %69 = arith.subf %68, %65 : vector<1x128xf32>
    %c0_i32 = arith.constant 0 : i32
    %c8_i32 = arith.constant 8 : i32
    %70 = arith.addi %c0_i32, %c8_i32 : i32
    %c1_i32 = arith.constant 1 : i32
    scf.for %arg21 = %c0_i32 to %70 step %c1_i32  : i32 {
      %c1_i32_153 = arith.constant 1 : i32
      %123 = arith.muli %arg21, %c1_i32_153 : i32
      %c0_i32_154 = arith.constant 0 : i32
      %124 = arith.addi %c0_i32_154, %123 : i32
      %c0_155 = arith.constant 0 : index
      %c0_156 = arith.constant 0 : index
      %125 = vector.load %arg15[%c0_155, %c0_156] : memref<8x512xf32, #tpu.memory_space<vmem>>, vector<8x512xf32>
      %126 = arith.truncf %125 : vector<8x512xf32> to vector<8x512xbf16>
      %c0_157 = arith.constant 0 : index
      %c0_158 = arith.constant 0 : index
      %127 = vector.load %arg4[%c0_157, %c0_158] : memref<512x128xbf16, #tpu.memory_space<vmem>>, vector<512x128xbf16>
      %cst_159 = arith.constant dense<0.000000e+00> : vector<8x128xf32>
      %128 = tpu.matmul %126, %127, %cst_159 {dimension_numbers = #tpu.dot_dimension_numbers<[1], [0], [0], [1], [0, 0, 1, 1], [], []>} : vector<8x512xbf16>, vector<512x128xbf16>, vector<8x128xf32> -> vector<8x128xf32>
      %129 = arith.index_cast %124 : i32 to index
      %c0_160 = arith.constant 0 : index
      %c0_161 = arith.constant 0 : index
      %130 = vector.load %arg13[%129, %c0_160, %c0_161] : memref<8x8x128xf32, #tpu.memory_space<vmem>>, vector<1x8x128xf32>
      %131 = vector.shape_cast %130 : vector<1x8x128xf32> to vector<8x128xf32>
      %132 = arith.addf %131, %128 : vector<8x128xf32>
      %c0_162 = arith.constant 0 : index
      %c0_163 = arith.constant 0 : index
      %133 = vector.load %arg18[%c0_162, %c0_163] : memref<8x128xf32, #tpu.memory_space<vmem>>, vector<8x128xf32>
      %c0_164 = arith.constant 0 : index
      %c0_165 = arith.constant 0 : index
      %134 = vector.load %arg17[%c0_164, %c0_165] : memref<8x128xf32, #tpu.memory_space<vmem>>, vector<8x128xf32>
      %135 = vector.broadcast %64 : vector<1x128xf32> to vector<8x128xf32>
      %136 = arith.mulf %134, %135 : vector<8x128xf32>
      %cst_166 = arith.constant 1.000000e+00 : f32
      %137 = vector.broadcast %cst_166 : f32 to vector<1x128xf32>
      %138 = arith.mulf %67, %137 : vector<1x128xf32>
      %139 = vector.broadcast %138 : vector<1x128xf32> to vector<8x128xf32>
      %140 = arith.mulf %139, %132 : vector<8x128xf32>
      %141 = arith.addf %136, %140 : vector<8x128xf32>
      %cst_167 = arith.constant 1.800000e+00 : f32
      %142 = vector.broadcast %cst_167 : f32 to vector<8x128xf32>
      %143 = arith.mulf %142, %133 : vector<8x128xf32>
      %cst_168 = arith.constant 2.000000e-01 : f32
      %144 = vector.broadcast %cst_168 : f32 to vector<8x128xf32>
      %145 = arith.addf %144, %143 : vector<8x128xf32>
      %146 = arith.subf %141, %145 : vector<8x128xf32>
      %cst_169 = arith.constant 0.000000e+00 : f32
      %147 = vector.broadcast %cst_169 : f32 to vector<8x128xf32>
      %148 = arith.cmpf ogt, %146, %147 : vector<8x128xf32>
      %149 = arith.extui %148 : vector<8x128xi1> to vector<8x128xi32>
      %150 = arith.sitofp %149 : vector<8x128xi32> to vector<8x128xf32>
      %cst_170 = arith.constant 1.800000e+00 : f32
      %151 = vector.broadcast %cst_170 : f32 to vector<8x128xf32>
      %152 = arith.mulf %133, %151 : vector<8x128xf32>
      %cst_171 = arith.constant 2.000000e-01 : f32
      %153 = vector.broadcast %cst_171 : f32 to vector<8x128xf32>
      %154 = arith.addf %152, %153 : vector<8x128xf32>
      %155 = arith.mulf %150, %154 : vector<8x128xf32>
      %156 = arith.subf %141, %155 : vector<8x128xf32>
      %c0_172 = arith.constant 0 : index
      %c0_173 = arith.constant 0 : index
      %157 = vector.load %arg17[%c0_172, %c0_173] : memref<8x128xf32, #tpu.memory_space<vmem>>, vector<8x128xf32>
      tpu.vector_store %arg17[%c0_172, %c0_173], %156 {strides = array<i32>} : memref<8x128xf32, #tpu.memory_space<vmem>>, vector<8x128xf32>,
      %158 = vector.broadcast %65 : vector<1x128xf32> to vector<8x128xf32>
      %159 = arith.mulf %158, %133 : vector<8x128xf32>
      %160 = vector.broadcast %69 : vector<1x128xf32> to vector<8x128xf32>
      %161 = arith.mulf %160, %150 : vector<8x128xf32>
      %162 = arith.addf %159, %161 : vector<8x128xf32>
      %c0_174 = arith.constant 0 : index
      %c0_175 = arith.constant 0 : index
      %163 = vector.load %arg18[%c0_174, %c0_175] : memref<8x128xf32, #tpu.memory_space<vmem>>, vector<8x128xf32>
      tpu.vector_store %arg18[%c0_174, %c0_175], %162 {strides = array<i32>} : memref<8x128xf32, #tpu.memory_space<vmem>>, vector<8x128xf32>,
      %c4_i32 = arith.constant 4 : i32
      %164 = arith.addi %124, %c4_i32 : i32
      %c1_i32_176 = arith.constant 1 : i32
      %165 = arith.subi %164, %c1_i32_176 : i32
      %166 = arith.index_cast %165 : i32 to index
      %c0_177 = arith.constant 0 : index
      %c0_178 = arith.constant 0 : index
      %167 = vector.load %arg14[%166, %c0_177, %c0_178] : memref<11x8x128xf32, #tpu.memory_space<vmem>>, vector<1x8x128xf32>
      %168 = vector.shape_cast %167 : vector<1x8x128xf32> to vector<8x128xf32>
      %169 = vector.shape_cast %150 : vector<8x128xf32> to vector<1x8x128xf32>
      tpu.vector_store %arg14[%166, %c0_177, %c0_178], %169 {strides = array<i32>} : memref<11x8x128xf32, #tpu.memory_space<vmem>>, vector<1x8x128xf32>,
      %c0_179 = arith.constant 0 : index
      %c0_180 = arith.constant 0 : index
      %170 = vector.load %arg15[%c0_179, %c0_180] : memref<8x512xf32, #tpu.memory_space<vmem>>, vector<8x384xf32>
      %171 = tpu.concatenate %150, %170 in 1 : vector<8x128xf32>, vector<8x384xf32> -> vector<8x512xf32>
      %c0_181 = arith.constant 0 : index
      %c0_182 = arith.constant 0 : index
      %172 = vector.load %arg15[%c0_181, %c0_182] : memref<8x512xf32, #tpu.memory_space<vmem>>, vector<8x512xf32>
      tpu.vector_store %arg15[%c0_181, %c0_182], %171 {strides = array<i32>} : memref<8x512xf32, #tpu.memory_space<vmem>>, vector<8x512xf32>,
    }
    %c8_i32_85 = arith.constant 8 : i32
    %c0_86 = arith.constant 0 : index
    %c0_87 = arith.constant 0 : index
    %71 = vector.load %arg7[%c0_86, %c0_87] : memref<1x128xf32, #tpu.memory_space<vmem>>, vector<1x128xf32>
    %72 = vector.shape_cast %71 : vector<1x128xf32> to vector<1x1x128xf32>
    %73 = vector.shape_cast %72 : vector<1x1x128xf32> to vector<1x1x128xf32>
    %74 = vector.broadcast %73 : vector<1x1x128xf32> to vector<8x8x128xf32>
    %c0_88 = arith.constant 0 : index
    %c0_89 = arith.constant 0 : index
    %c0_90 = arith.constant 0 : index
    %75 = vector.load %arg16[%c0_88, %c0_89, %c0_90] : memref<8x8x128xf32, #tpu.memory_space<vmem>>, vector<8x8x128xf32>
    tpu.vector_store %arg16[%c0_88, %c0_89, %c0_90], %74 {strides = array<i32>} : memref<8x8x128xf32, #tpu.memory_space<vmem>>, vector<8x8x128xf32>,
    %c3_91 = arith.constant 3 : index
    %c0_92 = arith.constant 0 : index
    %c0_93 = arith.constant 0 : index
    %76 = vector.load %arg14[%c3_91, %c0_92, %c0_93] : memref<11x8x128xf32, #tpu.memory_space<vmem>>, vector<8x8x128xf32>
    %77 = vector.shape_cast %76 : vector<8x8x128xf32> to vector<64x128xf32>
    %78 = arith.truncf %77 : vector<64x128xf32> to vector<64x128xbf16>
    %c0_94 = arith.constant 0 : index
    %c0_95 = arith.constant 0 : index
    %c0_96 = arith.constant 0 : index
    %79 = vector.load %arg6[%c0_94, %c0_95, %c0_96] : memref<4x128x128xbf16, #tpu.memory_space<vmem>>, vector<1x128x128xbf16>
    %80 = vector.shape_cast %79 : vector<1x128x128xbf16> to vector<128x128xbf16>
    %cst_97 = arith.constant dense<0.000000e+00> : vector<64x128xf32>
    %81 = tpu.matmul %78, %80, %cst_97 {dimension_numbers = #tpu.dot_dimension_numbers<[1], [0], [0], [1], [0, 0, 1, 1], [], []>} : vector<64x128xbf16>, vector<128x128xbf16>, vector<64x128xf32> -> vector<64x128xf32>
    %c0_98 = arith.constant 0 : index
    %c0_99 = arith.constant 0 : index
    %c0_100 = arith.constant 0 : index
    %82 = vector.load %arg16[%c0_98, %c0_99, %c0_100] : memref<8x8x128xf32, #tpu.memory_space<vmem>>, vector<8x8x128xf32>
    %83 = vector.shape_cast %81 : vector<64x128xf32> to vector<8x8x128xf32>
    %84 = arith.addf %82, %83 : vector<8x8x128xf32>
    %c0_101 = arith.constant 0 : index
    %c0_102 = arith.constant 0 : index
    %c0_103 = arith.constant 0 : index
    %85 = vector.load %arg16[%c0_101, %c0_102, %c0_103] : memref<8x8x128xf32, #tpu.memory_space<vmem>>, vector<8x8x128xf32>
    tpu.vector_store %arg16[%c0_101, %c0_102, %c0_103], %84 {strides = array<i32>} : memref<8x8x128xf32, #tpu.memory_space<vmem>>, vector<8x8x128xf32>,
    %c2_104 = arith.constant 2 : index
    %c0_105 = arith.constant 0 : index
    %c0_106 = arith.constant 0 : index
    %86 = vector.load %arg14[%c2_104, %c0_105, %c0_106] : memref<11x8x128xf32, #tpu.memory_space<vmem>>, vector<8x8x128xf32>
    %87 = vector.shape_cast %86 : vector<8x8x128xf32> to vector<64x128xf32>
    %88 = arith.truncf %87 : vector<64x128xf32> to vector<64x128xbf16>
    %c1_107 = arith.constant 1 : index
    %c0_108 = arith.constant 0 : index
    %c0_109 = arith.constant 0 : index
    %89 = vector.load %arg6[%c1_107, %c0_108, %c0_109] : memref<4x128x128xbf16, #tpu.memory_space<vmem>>, vector<1x128x128xbf16>
    %90 = vector.shape_cast %89 : vector<1x128x128xbf16> to vector<128x128xbf16>
    %cst_110 = arith.constant dense<0.000000e+00> : vector<64x128xf32>
    %91 = tpu.matmul %88, %90, %cst_110 {dimension_numbers = #tpu.dot_dimension_numbers<[1], [0], [0], [1], [0, 0, 1, 1], [], []>} : vector<64x128xbf16>, vector<128x128xbf16>, vector<64x128xf32> -> vector<64x128xf32>
    %c0_111 = arith.constant 0 : index
    %c0_112 = arith.constant 0 : index
    %c0_113 = arith.constant 0 : index
    %92 = vector.load %arg16[%c0_111, %c0_112, %c0_113] : memref<8x8x128xf32, #tpu.memory_space<vmem>>, vector<8x8x128xf32>
    %93 = vector.shape_cast %91 : vector<64x128xf32> to vector<8x8x128xf32>
    %94 = arith.addf %92, %93 : vector<8x8x128xf32>
    %c0_114 = arith.constant 0 : index
    %c0_115 = arith.constant 0 : index
    %c0_116 = arith.constant 0 : index
    %95 = vector.load %arg16[%c0_114, %c0_115, %c0_116] : memref<8x8x128xf32, #tpu.memory_space<vmem>>, vector<8x8x128xf32>
    tpu.vector_store %arg16[%c0_114, %c0_115, %c0_116], %94 {strides = array<i32>} : memref<8x8x128xf32, #tpu.memory_space<vmem>>, vector<8x8x128xf32>,
    %c1_117 = arith.constant 1 : index
    %c0_118 = arith.constant 0 : index
    %c0_119 = arith.constant 0 : index
    %96 = vector.load %arg14[%c1_117, %c0_118, %c0_119] : memref<11x8x128xf32, #tpu.memory_space<vmem>>, vector<8x8x128xf32>
    %97 = vector.shape_cast %96 : vector<8x8x128xf32> to vector<64x128xf32>
    %98 = arith.truncf %97 : vector<64x128xf32> to vector<64x128xbf16>
    %c2_120 = arith.constant 2 : index
    %c0_121 = arith.constant 0 : index
    %c0_122 = arith.constant 0 : index
    %99 = vector.load %arg6[%c2_120, %c0_121, %c0_122] : memref<4x128x128xbf16, #tpu.memory_space<vmem>>, vector<1x128x128xbf16>
    %100 = vector.shape_cast %99 : vector<1x128x128xbf16> to vector<128x128xbf16>
    %cst_123 = arith.constant dense<0.000000e+00> : vector<64x128xf32>
    %101 = tpu.matmul %98, %100, %cst_123 {dimension_numbers = #tpu.dot_dimension_numbers<[1], [0], [0], [1], [0, 0, 1, 1], [], []>} : vector<64x128xbf16>, vector<128x128xbf16>, vector<64x128xf32> -> vector<64x128xf32>
    %c0_124 = arith.constant 0 : index
    %c0_125 = arith.constant 0 : index
    %c0_126 = arith.constant 0 : index
    %102 = vector.load %arg16[%c0_124, %c0_125, %c0_126] : memref<8x8x128xf32, #tpu.memory_space<vmem>>, vector<8x8x128xf32>
    %103 = vector.shape_cast %101 : vector<64x128xf32> to vector<8x8x128xf32>
    %104 = arith.addf %102, %103 : vector<8x8x128xf32>
    %c0_127 = arith.constant 0 : index
    %c0_128 = arith.constant 0 : index
    %c0_129 = arith.constant 0 : index
    %105 = vector.load %arg16[%c0_127, %c0_128, %c0_129] : memref<8x8x128xf32, #tpu.memory_space<vmem>>, vector<8x8x128xf32>
    tpu.vector_store %arg16[%c0_127, %c0_128, %c0_129], %104 {strides = array<i32>} : memref<8x8x128xf32, #tpu.memory_space<vmem>>, vector<8x8x128xf32>,
    %c0_130 = arith.constant 0 : index
    %c0_131 = arith.constant 0 : index
    %c0_132 = arith.constant 0 : index
    %106 = vector.load %arg14[%c0_130, %c0_131, %c0_132] : memref<11x8x128xf32, #tpu.memory_space<vmem>>, vector<8x8x128xf32>
    %107 = vector.shape_cast %106 : vector<8x8x128xf32> to vector<64x128xf32>
    %108 = arith.truncf %107 : vector<64x128xf32> to vector<64x128xbf16>
    %c3_133 = arith.constant 3 : index
    %c0_134 = arith.constant 0 : index
    %c0_135 = arith.constant 0 : index
    %109 = vector.load %arg6[%c3_133, %c0_134, %c0_135] : memref<4x128x128xbf16, #tpu.memory_space<vmem>>, vector<1x128x128xbf16>
    %110 = vector.shape_cast %109 : vector<1x128x128xbf16> to vector<128x128xbf16>
    %cst_136 = arith.constant dense<0.000000e+00> : vector<64x128xf32>
    %111 = tpu.matmul %108, %110, %cst_136 {dimension_numbers = #tpu.dot_dimension_numbers<[1], [0], [0], [1], [0, 0, 1, 1], [], []>} : vector<64x128xbf16>, vector<128x128xbf16>, vector<64x128xf32> -> vector<64x128xf32>
    %c0_137 = arith.constant 0 : index
    %c0_138 = arith.constant 0 : index
    %c0_139 = arith.constant 0 : index
    %112 = vector.load %arg16[%c0_137, %c0_138, %c0_139] : memref<8x8x128xf32, #tpu.memory_space<vmem>>, vector<8x8x128xf32>
    %113 = vector.shape_cast %111 : vector<64x128xf32> to vector<8x8x128xf32>
    %114 = arith.addf %112, %113 : vector<8x8x128xf32>
    %c0_140 = arith.constant 0 : index
    %c0_141 = arith.constant 0 : index
    %c0_142 = arith.constant 0 : index
    %115 = vector.load %arg16[%c0_140, %c0_141, %c0_142] : memref<8x8x128xf32, #tpu.memory_space<vmem>>, vector<8x8x128xf32>
    tpu.vector_store %arg16[%c0_140, %c0_141, %c0_142], %114 {strides = array<i32>} : memref<8x8x128xf32, #tpu.memory_space<vmem>>, vector<8x8x128xf32>,
    %c0_143 = arith.constant 0 : index
    %c0_144 = arith.constant 0 : index
    %116 = vector.load %arg10[%c0_143, %c0_144] : memref<1x128xf32, #tpu.memory_space<vmem>>, vector<1x128xf32>
    %c0_145 = arith.constant 0 : index
    %c0_146 = arith.constant 0 : index
    %117 = vector.load %arg11[%c0_145, %c0_146] : memref<1x128xf32, #tpu.memory_space<vmem>>, vector<1x128xf32>
    %cst_147 = arith.constant 1.000000e+00 : f32
    %118 = vector.broadcast %cst_147 : f32 to vector<1x128xf32>
    %119 = arith.subf %118, %116 : vector<1x128xf32>
    %cst_148 = arith.constant 1.000000e+00 : f32
    %120 = vector.broadcast %cst_148 : f32 to vector<1x128xf32>
    %121 = arith.subf %120, %117 : vector<1x128xf32>
    %c0_i32_149 = arith.constant 0 : i32
    %c8_i32_150 = arith.constant 8 : i32
    %122 = arith.addi %c0_i32_149, %c8_i32_150 : i32
    %c1_i32_151 = arith.constant 1 : i32
    scf.for %arg21 = %c0_i32_149 to %122 step %c1_i32_151  : i32 {
      %c1_i32_153 = arith.constant 1 : i32
      %123 = arith.muli %arg21, %c1_i32_153 : i32
      %c0_i32_154 = arith.constant 0 : i32
      %124 = arith.addi %c0_i32_154, %123 : i32
      %125 = arith.index_cast %124 : i32 to index
      %c0_155 = arith.constant 0 : index
      %c0_156 = arith.constant 0 : index
      %126 = vector.load %arg16[%125, %c0_155, %c0_156] : memref<8x8x128xf32, #tpu.memory_space<vmem>>, vector<1x8x128xf32>
      %127 = vector.shape_cast %126 : vector<1x8x128xf32> to vector<8x128xf32>
      %c0_157 = arith.constant 0 : index
      %c0_158 = arith.constant 0 : index
      %128 = vector.load %arg20[%c0_157, %c0_158] : memref<8x128xf32, #tpu.memory_space<vmem>>, vector<8x128xf32>
      %c0_159 = arith.constant 0 : index
      %c0_160 = arith.constant 0 : index
      %129 = vector.load %arg19[%c0_159, %c0_160] : memref<8x128xf32, #tpu.memory_space<vmem>>, vector<8x128xf32>
      %130 = vector.broadcast %116 : vector<1x128xf32> to vector<8x128xf32>
      %131 = arith.mulf %129, %130 : vector<8x128xf32>
      %cst_161 = arith.constant 1.000000e+00 : f32
      %132 = vector.broadcast %cst_161 : f32 to vector<1x128xf32>
      %133 = arith.mulf %119, %132 : vector<1x128xf32>
      %134 = vector.broadcast %133 : vector<1x128xf32> to vector<8x128xf32>
      %135 = arith.mulf %134, %127 : vector<8x128xf32>
      %136 = arith.addf %131, %135 : vector<8x128xf32>
      %cst_162 = arith.constant 1.800000e+00 : f32
      %137 = vector.broadcast %cst_162 : f32 to vector<8x128xf32>
      %138 = arith.mulf %137, %128 : vector<8x128xf32>
      %cst_163 = arith.constant 2.000000e-01 : f32
      %139 = vector.broadcast %cst_163 : f32 to vector<8x128xf32>
      %140 = arith.addf %139, %138 : vector<8x128xf32>
      %141 = arith.subf %136, %140 : vector<8x128xf32>
      %cst_164 = arith.constant 0.000000e+00 : f32
      %142 = vector.broadcast %cst_164 : f32 to vector<8x128xf32>
      %143 = arith.cmpf ogt, %141, %142 : vector<8x128xf32>
      %144 = arith.extui %143 : vector<8x128xi1> to vector<8x128xi32>
      %145 = arith.sitofp %144 : vector<8x128xi32> to vector<8x128xf32>
      %cst_165 = arith.constant 1.800000e+00 : f32
      %146 = vector.broadcast %cst_165 : f32 to vector<8x128xf32>
      %147 = arith.mulf %128, %146 : vector<8x128xf32>
      %cst_166 = arith.constant 2.000000e-01 : f32
      %148 = vector.broadcast %cst_166 : f32 to vector<8x128xf32>
      %149 = arith.addf %147, %148 : vector<8x128xf32>
      %150 = arith.mulf %145, %149 : vector<8x128xf32>
      %151 = arith.subf %136, %150 : vector<8x128xf32>
      %c0_167 = arith.constant 0 : index
      %c0_168 = arith.constant 0 : index
      %152 = vector.load %arg19[%c0_167, %c0_168] : memref<8x128xf32, #tpu.memory_space<vmem>>, vector<8x128xf32>
      tpu.vector_store %arg19[%c0_167, %c0_168], %151 {strides = array<i32>} : memref<8x128xf32, #tpu.memory_space<vmem>>, vector<8x128xf32>,
      %153 = vector.broadcast %117 : vector<1x128xf32> to vector<8x128xf32>
      %154 = arith.mulf %153, %128 : vector<8x128xf32>
      %155 = vector.broadcast %121 : vector<1x128xf32> to vector<8x128xf32>
      %156 = arith.mulf %155, %145 : vector<8x128xf32>
      %157 = arith.addf %154, %156 : vector<8x128xf32>
      %c0_169 = arith.constant 0 : index
      %c0_170 = arith.constant 0 : index
      %158 = vector.load %arg20[%c0_169, %c0_170] : memref<8x128xf32, #tpu.memory_space<vmem>>, vector<8x128xf32>
      tpu.vector_store %arg20[%c0_169, %c0_170], %157 {strides = array<i32>} : memref<8x128xf32, #tpu.memory_space<vmem>>, vector<8x128xf32>,
      %159 = arith.index_cast %124 : i32 to index
      %c0_171 = arith.constant 0 : index
      %c0_172 = arith.constant 0 : index
      %160 = vector.load %arg12[%159, %c0_171, %c0_172] : memref<8x8x128xf32, #tpu.memory_space<vmem>>, vector<1x8x128xf32>
      %161 = vector.shape_cast %160 : vector<1x8x128xf32> to vector<8x128xf32>
      %162 = vector.shape_cast %145 : vector<8x128xf32> to vector<1x8x128xf32>
      tpu.vector_store %arg12[%159, %c0_171, %c0_172], %162 {strides = array<i32>} : memref<8x8x128xf32, #tpu.memory_space<vmem>>, vector<1x8x128xf32>,
    }
    %c8_i32_152 = arith.constant 8 : i32
    return
  }
  func.func @transform_0(%arg0: i32) -> (i32, i32, i32) {
    %c0_i32 = arith.constant 0 : i32
    %c0_i32_0 = arith.constant 0 : i32
    %c0_i32_1 = arith.constant 0 : i32
    return %c0_i32, %arg0, %c0_i32_0 : i32, i32, i32
  }
  func.func @transform_1(%arg0: i32) -> (i32, i32, i32) {
    %c0_i32 = arith.constant 0 : i32
    %c0_i32_0 = arith.constant 0 : i32
    %c0_i32_1 = arith.constant 0 : i32
    %c0_i32_2 = arith.constant 0 : i32
    return %c0_i32, %c0_i32_0, %c0_i32_1 : i32, i32, i32
  }
  func.func @transform_2(%arg0: i32) -> (i32, i32) {
    %c0_i32 = arith.constant 0 : i32
    %c0_i32_0 = arith.constant 0 : i32
    %c0_i32_1 = arith.constant 0 : i32
    return %c0_i32, %c0_i32_0 : i32, i32
  }
  func.func @transform_3(%arg0: i32) -> (i32, i32) {
    %c0_i32 = arith.constant 0 : i32
    %c0_i32_0 = arith.constant 0 : i32
    %c0_i32_1 = arith.constant 0 : i32
    return %c0_i32, %c0_i32_0 : i32, i32
  }
  func.func @transform_4(%arg0: i32) -> (i32, i32) {
    %c0_i32 = arith.constant 0 : i32
    %c0_i32_0 = arith.constant 0 : i32
    %c0_i32_1 = arith.constant 0 : i32
    return %c0_i32, %c0_i32_0 : i32, i32
  }
  func.func @transform_5(%arg0: i32) -> (i32, i32, i32) {
    %c0_i32 = arith.constant 0 : i32
    %c0_i32_0 = arith.constant 0 : i32
    %c0_i32_1 = arith.constant 0 : i32
    %c0_i32_2 = arith.constant 0 : i32
    return %c0_i32, %c0_i32_0, %c0_i32_1 : i32, i32, i32
  }
  func.func @transform_6(%arg0: i32) -> (i32, i32) {
    %c0_i32 = arith.constant 0 : i32
    %c0_i32_0 = arith.constant 0 : i32
    %c0_i32_1 = arith.constant 0 : i32
    return %c0_i32, %c0_i32_0 : i32, i32
  }
  func.func @transform_7(%arg0: i32) -> (i32, i32) {
    %c0_i32 = arith.constant 0 : i32
    %c0_i32_0 = arith.constant 0 : i32
    %c0_i32_1 = arith.constant 0 : i32
    return %c0_i32, %c0_i32_0 : i32, i32
  }
  func.func @transform_8(%arg0: i32) -> (i32, i32) {
    %c0_i32 = arith.constant 0 : i32
    %c0_i32_0 = arith.constant 0 : i32
    %c0_i32_1 = arith.constant 0 : i32
    return %c0_i32, %c0_i32_0 : i32, i32
  }
  func.func @transform_9(%arg0: i32) -> (i32, i32) {
    %c0_i32 = arith.constant 0 : i32
    %c0_i32_0 = arith.constant 0 : i32
    %c0_i32_1 = arith.constant 0 : i32
    return %c0_i32, %c0_i32_0 : i32, i32
  }
  func.func @transform_10(%arg0: i32) -> (i32, i32) {
    %c0_i32 = arith.constant 0 : i32
    %c0_i32_0 = arith.constant 0 : i32
    %c0_i32_1 = arith.constant 0 : i32
    return %c0_i32, %c0_i32_0 : i32, i32
  }
  func.func @transform_11(%arg0: i32) -> (i32, i32, i32) {
    %c0_i32 = arith.constant 0 : i32
    %c0_i32_0 = arith.constant 0 : i32
    %c0_i32_1 = arith.constant 0 : i32
    return %c0_i32, %arg0, %c0_i32_0 : i32, i32, i32
  }
}

</mosaic_0001>

<bundles_post_ra>
// kernel: drsnn_forward.1
= control target key start
LH: loop header
LB: loop body
LE: loop exit
PB: predicated region body
PF: predicated region fallthrough
CT: control target
= control target key end

     0   :  { %v2621_v0 = vmov 0.0   ;;  %v2622_v1 = vmov 0.2   ;;  %s3134_s1 = inlined_call_operand.vmem [shape: bf16[4,128,128], index: 1, kind: input, shape index: {}]   ;;  %s3135_s3 = inlined_call_operand.vmem [shape: bf16[512,128], index: 3, kind: input, shape index: {}]   ;;  %s3136_s5 = inlined_call_operand.vmem [shape: bf16[4,128,128], index: 5, kind: input, shape index: {}]   ;;  %s3137_s6 = inlined_call_operand.vmem [shape: f32[1,128], index: 6, kind: input, shape index: {}]   ;;  %s3138_s9 = inlined_call_operand.vmem [shape: f32[1,128], index: 9, kind: input, shape index: {}]   ;;  %s3139_s10 = inlined_call_operand.vmem [shape: f32[1,128], index: 10, kind: input, shape index: {}]   ;;  %s3140_s11 = inlined_call_operand.vmem [shape: f32[8,8,128], index: 11, kind: output, shape index: {}]   ;;  %s3141_s0 = inlined_call_operand.vmem [shape: f32[11,8,128], index: 0, kind: input, shape index: {}]   ;;  %s3142_s7 = inlined_call_operand.vmem [shape: f32[1,128], index: 7, kind: input, shape index: {}]   ;;  %s3143_s8 = inlined_call_operand.vmem [shape: f32[1,128], index: 8, kind: input, shape index: {}]   ;;  %s3144_s2 = inlined_call_operand.vmem [shape: f32[1,128], index: 2, kind: input, shape index: {}]   ;;  %s3145_s4 = inlined_call_operand.vmem [shape: f32[1,128], index: 4, kind: input, shape index: {}]  }
   0x1   :  { %39 = vst [vmem:[#allocation6] sm:$0xff] %v2621_v0  ;;  %40 = vst [vmem:[#allocation7] sm:$0xff] %v2622_v1  ;;  %v2509_v2 = vld [vmem:[%s3134_s1 + $0x38] sm:$0xff]   ;;  %v2510_v3 = vld [vmem:[%s3134_s1 + $0x30] sm:$0xff]  }
   0x2   :  { %41 = vst [vmem:[#allocation8] sm:$0xff] %v2621_v0  ;;  %42 = vst [vmem:[#allocation9] sm:$0xff] %v2622_v1  ;;  %2297 = vmatprep.subr.bf16.mxu0 %v2509_v2  ;;  %v2511_v4 = vld [vmem:[%s3134_s1 + $0x78] sm:$0xff]   ;;  %v2512_v5 = vld [vmem:[%s3134_s1 + $0x28] sm:$0xff]  }
   0x3   :  { %43 = vst [vmem:[#allocation4 + $0x10] sm:$0xff] %v2621_v0  ;;  %44 = vst [vmem:[#allocation4] sm:$0xff] %v2621_v0  ;;  %2298 = vmatpush3.bf16.msra.mxu0 %v2509_v2  ;;  %2321 = vmatprep.subr.bf16.mxu1 %v2511_v4  ;;  %v2513_v6 = vld [vmem:[%s3134_s1 + $0x70] sm:$0xff]   ;;  %v2515_v7 = vld [vmem:[%s3134_s1 + $0x68] sm:$0xff]  }
   0x4   :  { %45 = vst [vmem:[#allocation4 + $0x18] sm:$0xff] %v2621_v0  ;;  %46 = vst [vmem:[#allocation4 + $0x8] sm:$0xff] %v2621_v0  ;;  %2299 = vmatprep.subr.bf16.mxu0 %v2510_v3  ;;  %2322 = vmatpush3.bf16.msra.mxu1 %v2511_v4  ;;  %v2514_v8 = vld [vmem:[%s3134_s1 + $0x20] sm:$0xff]   ;;  %v2516_v10 = vld [vmem:[%s3134_s1 + $0x18] sm:$0xff]  }
   0x5   :  { %47 = vst [vmem:[#allocation3] sm:$0xff] %v2621_v0  ;;  %48 = vst [vmem:[#allocation3 + $0x8] sm:$0xff] %v2621_v0  ;;  %2323 = vmatprep.subr.bf16.mxu1 %v2513_v6  ;;  %v2517_v9 = vld [vmem:[%s3134_s1 + $0x60] sm:$0xff]   ;;  %v2519_v11 = vld [vmem:[%s3134_s1 + $0x58] sm:$0xff]  }
   0x6   :  { %49 = vst [vmem:[#allocation3 + $0x10] sm:$0xff] %v2621_v0  ;;  %v1934_v12 = vld [vmem:[%s3141_s0 + $0x18] sm:$0xff]  ;;  %v1935_v13 = vld [vmem:[%s3141_s0 + $0x20] sm:$0xff]  ;;  %v2518_v14 = vld [vmem:[%s3134_s1 + $0x10] sm:$0xff]  }
   0x7   :  { %2300 = vmatpush3.bf16.msra.mxu0 %v2510_v3  ;;  %v2724_v15 = vpack.c.bf16 %v1935_v13, %v1934_v12  ;;  %v2521_v16 = vld [vmem:[%s3134_s1 + $0x50] sm:$0xff]   ;;  %v2520_v19 = vld [vmem:[%s3134_s1 + $0x8] sm:$0xff]   ;;  %v2522_v21 = vld [vmem:[%s3134_s1] sm:$0xff]  }
   0x8   :  { %2301 = vmatprep.subr.bf16.mxu0 %v2512_v5  ;;  %2324 = vmatpush3.bf16.msra.mxu1 %v2513_v6  ;;  %v1950_v17 = vld [vmem:[%s3141_s0 + $0x10] sm:$0xff]  ;;  %v2523_v20 = vld [vmem:[%s3134_s1 + $0x48] sm:$0xff]   ;;  %v2524_v24 = vld [vmem:[%s3134_s1 + $0x40] sm:$0xff]  }
   0x9   :  { %2325 = vmatprep.subr.bf16.mxu1 %v2515_v7  ;;  %2313 = vmatprep.mubr.bf16.mxu0 %v2724_v15  ;;  %v2733_v18 = vpack.c.bf16 %v1934_v12, %v1950_v17  ;;  %v1936_v22 = vld [vmem:[%s3141_s0 + $0x28] sm:$0xff]  ;;  %v1937_v23 = vld [vmem:[%s3141_s0 + $0x30] sm:$0xff]  ;;  %v2525_v25 = vld [vmem:[%s3134_s1 + $0xb8] sm:$0xff]  }
   0xa   :  { %v1938_v26 = vld [vmem:[%s3141_s0 + $0x38] sm:$0xff]  ;;  %v1939_v27 = vld [vmem:[%s3141_s0 + $0x40] sm:$0xff]  ;;  %v2763_v28 = vpack.c.bf16 %v1937_v23, %v1936_v22  ;;  %v2526_v31 = vld [vmem:[%s3134_s1 + $0xb0] sm:$0xff]   ;;  %v2773_v32 = vpack.c.bf16 %v1936_v22, %v1935_v13 }
   0xb   :  { %2302 = vmatpush3.bf16.msra.mxu0 %v2512_v5  ;;  %2337 = vmatprep.mubr.bf16.mxu1 %v2733_v18  ;;  %v2527_v29 = vld [vmem:[%s3134_s1 + $0xf8] sm:$0xff]   ;;  %v2768_v30 = vpack.c.bf16 %v1939_v27, %v1938_v26  ;;  %v2775_v33 = vpack.c.bf16 %v1938_v26, %v1937_v23  ;;  %v2529_v34 = vld [vmem:[%s3134_s1 + $0xf0] sm:$0xff]   ;;  %v1940_v35 = vld [vmem:[%s3141_s0 + $0x48] sm:$0xff] }
   0xc   :  { %2303 = vmatprep.subr.bf16.mxu0 %v2514_v8  ;;  %2326 = vmatpush3.bf16.msra.mxu1 %v2515_v7  ;;  %v1941_v36 = vld [vmem:[%s3141_s0 + $0x50] sm:$0xff]  ;;  %v2528_v37 = vld [vmem:[%s3134_s1 + $0xa8] sm:$0xff]   ;;  %v594_v41 = vld [vmem:[%s3141_s0] sm:$0xff]  ;;  %v272_v44 = vpack.c.bf16 %v1940_v35, %v1939_v27 }
   0xd   :  { %2327 = vmatprep.subr.bf16.mxu1 %v2517_v9  ;;  %v1982_v38 = vld [vmem:[%s3141_s0 + $0x8] sm:$0xff]  ;;  %v106_v40 = vpack.c.bf16 %v1941_v36, %v1940_v35  ;;  %v2530_v43 = vld [vmem:[%s3134_s1 + $0xa0] sm:$0xff]   ;;  %v2532_v47 = vld [vmem:[%s3134_s1 + $0x98] sm:$0xff]  }
   0xe   :  { %v2531_v39 = vld [vmem:[%s3134_s1 + $0xe8] sm:$0xff]   ;;  %v436_v42 = vpack.c.bf16 %v1950_v17, %v1982_v38  ;;  %v602_v45 = vpack.c.bf16 %v1982_v38, %v594_v41  ;;  %v2533_v46 = vld [vmem:[%s3134_s1 + $0xe0] sm:$0xff]   ;;  %v2535_v48 = vld [vmem:[%s3134_s1 + $0xd8] sm:$0xff]  }
   0xf   :  { %2304 = vmatpush3.bf16.msra.mxu0 %v2514_v8  ;;  %v2534_v49 = vld [vmem:[%s3134_s1 + $0x90] sm:$0xff]   ;;  %v2536_v51 = vld [vmem:[%s3134_s1 + $0x88] sm:$0xff]   ;;  %v2538_v53 = vld [vmem:[%s3134_s1 + $0x80] sm:$0xff]  }
  0x10   :  { %2305 = vmatprep.subr.bf16.mxu0 %v2516_v10  ;;  %2328 = vmatpush3.bf16.msra.mxu1 %v2517_v9  ;;  %v2537_v50 = vld [vmem:[%s3134_s1 + $0xd0] sm:$0xff]   ;;  %v2539_v52 = vld [vmem:[%s3134_s1 + $0xc8] sm:$0xff]   ;;  %v2540_v54 = vld [vmem:[%s3134_s1 + $0xc0] sm:$0xff]  }
  0x11   :  { %2329 = vmatprep.subr.bf16.mxu1 %v2519_v11  ;;  %v2841_v55 = vld [vmem:[%s3142_s7] sm:$0x1] }
  0x12   :  { %v2846_v56 = vld [vmem:[%s3143_s8] sm:$0x1]  ;;  %v762_v57 = vsub.f32 1.0, %v2841_v55 }
  0x13   :  { %2306 = vmatpush3.bf16.msra.mxu0 %v2516_v10  ;;  %v763_v58 = vsub.f32 1.0, %v2846_v56  ;;  %v1932_v4 = vld [vmem:[%s3144_s2] ss:$0 sm:$0xff]  ;;  %s2856_s2 = smov 0  }
  0x14   :  { %2307 = vmatprep.subr.bf16.mxu0 %v2518_v14  ;;  %2330 = vmatpush3.bf16.msra.mxu1 %v2519_v11  ;;  %v1933_v5 = vld [vmem:[%s3145_s4] ss:$0 sm:$0xff] }
  0x15   :  { %2331 = vmatprep.subr.bf16.mxu1 %v2521_v16  ;;  %v81_v8 = vadd.f32 %v1933_v5, %v1932_v4 }
  0x17   :  { %2308 = vmatpush3.bf16.msra.mxu0 %v2518_v14 }
  0x18   :  { %2309 = vmatprep.subr.bf16.mxu0 %v2520_v19  ;;  %2332 = vmatpush3.bf16.msra.mxu1 %v2521_v16 }
  0x19   :  { %2333 = vmatprep.subr.bf16.mxu1 %v2523_v20 }
  0x1b   :  { %2310 = vmatpush3.bf16.msra.mxu0 %v2520_v19 }
  0x1c   :  { %2311 = vmatprep.subr.bf16.mxu0 %v2522_v21  ;;  %2334 = vmatpush3.bf16.msra.mxu1 %v2523_v20 }
  0x1d   :  { %2335 = vmatprep.subr.bf16.mxu1 %v2524_v24 }
  0x1f   :  { %2312 = vmatpush3.bf16.msra.mxu0 %v2522_v21 }
  0x20   :  { %2345 = vmatprep.subr.bf16.mxu0 %v2525_v25  ;;  %2336 = vmatpush3.bf16.msra.mxu1 %v2524_v24 }
  0x21   :  { %2369 = vmatprep.subr.bf16.mxu1 %v2527_v29 }
  0x22   :  { %2314 = vmatmul.mubr.bf16.vlgmr.msra.gmra.mxu0 %v2763_v28 }
  0x23   :  { %2346 = vmatpush3.bf16.msra.mxu0 %v2525_v25  ;;  %2317 = vmatprep.mubr.bf16.mxu0 %v2768_v30 }
  0x24   :  { %2347 = vmatprep.subr.bf16.mxu0 %v2526_v31  ;;  %2338 = vmatmul.mubr.bf16.vlgmr.msra.gmra.mxu1 %v2773_v32 }
  0x25   :  { %2370 = vmatpush3.bf16.msra.mxu1 %v2527_v29  ;;  %2341 = vmatprep.mubr.bf16.mxu1 %v2775_v33 }
  0x26   :  { %2371 = vmatprep.subr.bf16.mxu1 %v2529_v34 }
  0x27   :  { %2348 = vmatpush3.bf16.msra.mxu0 %v2526_v31 }
  0x28   :  { %2349 = vmatprep.subr.bf16.mxu0 %v2528_v37 }
  0x29   :  { %2372 = vmatpush3.bf16.msra.mxu1 %v2529_v34 }
  0x2a   :  { %2373 = vmatprep.subr.bf16.mxu1 %v2531_v39  ;;  %2318 = vmatmul.mubr.bf16.gmra.mxu0 %v106_v40 }
  0x2b   :  { %2350 = vmatpush3.bf16.msra.mxu0 %v2528_v37  ;;  %2361 = vmatprep.mubr.bf16.mxu0 %v436_v42 }
  0x2c   :  { %2351 = vmatprep.subr.bf16.mxu0 %v2530_v43  ;;  %2342 = vmatmul.mubr.bf16.gmra.mxu1 %v272_v44 }
  0x2d   :  { %2374 = vmatpush3.bf16.msra.mxu1 %v2531_v39  ;;  %2385 = vmatprep.mubr.bf16.mxu1 %v602_v45 }
  0x2e   :  { %2375 = vmatprep.subr.bf16.mxu1 %v2533_v46 }
  0x2f   :  { %2352 = vmatpush3.bf16.msra.mxu0 %v2530_v43 }
  0x30   :  { %2353 = vmatprep.subr.bf16.mxu0 %v2532_v47 }
  0x31   :  { %2376 = vmatpush3.bf16.msra.mxu1 %v2533_v46 }
  0x32   :  { %2377 = vmatprep.subr.bf16.mxu1 %v2535_v48 }
  0x33   :  { %2354 = vmatpush3.bf16.msra.mxu0 %v2532_v47 }
  0x34   :  { %2355 = vmatprep.subr.bf16.mxu0 %v2534_v49 }
  0x35   :  { %2378 = vmatpush3.bf16.msra.mxu1 %v2535_v48 }
  0x36   :  { %2379 = vmatprep.subr.bf16.mxu1 %v2537_v50 }
  0x37   :  { %2356 = vmatpush3.bf16.msra.mxu0 %v2534_v49 }
  0x38   :  { %2357 = vmatprep.subr.bf16.mxu0 %v2536_v51 }
  0x39   :  { %2380 = vmatpush3.bf16.msra.mxu1 %v2537_v50 }
  0x3a   :  { %2381 = vmatprep.subr.bf16.mxu1 %v2539_v52 }
  0x3b   :  { %2358 = vmatpush3.bf16.msra.mxu0 %v2536_v51 }
  0x3c   :  { %2359 = vmatprep.subr.bf16.mxu0 %v2538_v53 }
  0x3d   :  { %2382 = vmatpush3.bf16.msra.mxu1 %v2539_v52 }
  0x3e   :  { %2383 = vmatprep.subr.bf16.mxu1 %v2540_v54 }
  0x3f   :  { %2360 = vmatpush3.bf16.msra.mxu0 %v2538_v53 }
  0x41   :  { %2384 = vmatpush3.bf16.msra.mxu1 %v2540_v54 }
  0x42   :  { %2362 = vmatmul.mubr.bf16.vlgmr.msra.gmra.mxu0 %v2724_v15 }
  0x43   :  { %2365 = vmatprep.mubr.bf16.mxu0 %v2763_v28 }
  0x44   :  { %2386 = vmatmul.mubr.bf16.vlgmr.msra.gmra.mxu1 %v2733_v18 }
  0x45   :  { %2389 = vmatprep.mubr.bf16.mxu1 %v2773_v32 }
  0x4a   :  { %2366 = vmatmul.mubr.bf16.gmra.mxu0 %v2768_v30 }
  0x4c   :  { %2390 = vmatmul.mubr.bf16.gmra.mxu1 %v2775_v33 }
  0xe2   :  { %v2315_v59 = vpop.f32.mrf.mxu0 }
  0xe3   :  { %v246_v11 = vadd.f32 %v2315_v59, %v81_v8 }
  0xe4   :  { %v2339_v60 = vpop.f32.mrf.mxu1  ;;  %v205_v61 = vpop.f32.mrf.mxu0 }
  0xe5   :  { %v244_v13 = vadd.f32 %v1932_v4, %v205_v61  ;;  %v413_v16 = vadd.f32 %v2339_v60, %v246_v11 }
  0xe6   :  { %v372_v62 = vpop.f32.mrf.mxu1  ;;  %v2316_v63 = vpop.f32.mrf.mxu0 }
  0xe7   :  { %v247_v15 = vadd.f32 %v2316_v63, %v81_v8  ;;  %v411_v20 = vadd.f32 %v372_v62, %v244_v13 }
  0xe8   :  { %v2340_v0 = vpop.f32.mrf.mxu1  ;;  %v208_v1 = vpop.f32.mrf.mxu0 }
  0xe9   :  { %v245_v19 = vadd.f32 %v208_v1, %v81_v8  ;;  %v414_v24 = vadd.f32 %v2340_v0, %v247_v15 }
  0xea   :  { %v375_v2 = vpop.f32.mrf.mxu1  ;;  %v2319_v3 = vpop.f32.mrf.mxu0 }
  0xeb   :  { %v250_v25 = vadd.f32 %v2319_v3, %v81_v8  ;;  %v412_v30 = vadd.f32 %v375_v2, %v245_v19 }
  0xec   :  { %v2343_v6 = vpop.f32.mrf.mxu1  ;;  %v221_v7 = vpop.f32.mrf.mxu0 }
  0xed   :  { %v248_v31 = vadd.f32 %v221_v7, %v81_v8  ;;  %v417_v37 = vadd.f32 %v2343_v6, %v250_v25 }
  0xee   :  { %v388_v9 = vpop.f32.mrf.mxu1  ;;  %v2320_v10 = vpop.f32.mrf.mxu0 }
  0xef   :  { %v251_v36 = vadd.f32 %v2320_v10, %v81_v8  ;;  %v415_v43 = vadd.f32 %v388_v9, %v248_v31 }
  0xf0   :  { %v2344_v12 = vpop.f32.mrf.mxu1  ;;  %v224_v14 = vpop.f32.mrf.mxu0 }
  0xf1   :  { %v249_v42 = vadd.f32 %v224_v14, %v81_v8  ;;  %v418_v48 = vadd.f32 %v2344_v12, %v251_v36 }
  0xf2   :  { %v391_v17 = vpop.f32.mrf.mxu1 }
  0xf3   :  { %v416_v53 = vadd.f32 %v391_v17, %v249_v42 }
 0x102   :  { %v2363_v18 = vpop.f32.mrf.mxu0 }
 0x103   :  { %v580_v21 = vadd.f32 %v2363_v18, %v413_v16 }
 0x104   :  { %v539_v22 = vpop.f32.mrf.mxu0  ;;  %v2387_v23 = vpop.f32.mrf.mxu1 }
 0x105   :  { %v578_v26 = vadd.f32 %v539_v22, %v411_v20  ;;  %v746_v27 = vadd.f32 %v2387_v23, %v580_v21 }
 0x106   :  { %v2364_v28 = vpop.f32.mrf.mxu0  ;;  %v705_v29 = vpop.f32.mrf.mxu1 }
 0x107   :  { %v581_v32 = vadd.f32 %v2364_v28, %v414_v24  ;;  %754 = vst [vmem:[#allocation2 + $0x10] sm:$0xff] %v746_v27  ;;  %v744_v33 = vadd.f32 %v705_v29, %v578_v26 }
 0x108   :  { %v542_v34 = vpop.f32.mrf.mxu0  ;;  %v2388_v35 = vpop.f32.mrf.mxu1 }
 0x109   :  { %v579_v38 = vadd.f32 %v542_v34, %v412_v30  ;;  %752 = vst [vmem:[#allocation2] sm:$0xff] %v744_v33  ;;  %v747_v39 = vadd.f32 %v2388_v35, %v581_v32 }
 0x10a   :  { %v2367_v40 = vpop.f32.mrf.mxu0  ;;  %v708_v41 = vpop.f32.mrf.mxu1 }
 0x10b   :  { %v584_v44 = vadd.f32 %v2367_v40, %v417_v37  ;;  %755 = vst [vmem:[#allocation2 + $0x18] sm:$0xff] %v747_v39  ;;  %v745_v45 = vadd.f32 %v708_v41, %v579_v38 }
 0x10c   :  { %v555_v46 = vpop.f32.mrf.mxu0  ;;  %v2391_v47 = vpop.f32.mrf.mxu1 }
 0x10d   :  { %v582_v49 = vadd.f32 %v555_v46, %v415_v43  ;;  %753 = vst [vmem:[#allocation2 + $0x8] sm:$0xff] %v745_v45  ;;  %v750_v50 = vadd.f32 %v2391_v47, %v584_v44 }
 0x10e   :  { %v2368_v51 = vpop.f32.mrf.mxu0  ;;  %v721_v52 = vpop.f32.mrf.mxu1 }
 0x10f   :  { %v585_v54 = vadd.f32 %v2368_v51, %v418_v48  ;;  %758 = vst [vmem:[#allocation2 + $0x30] sm:$0xff] %v750_v50  ;;  %v748_v59 = vadd.f32 %v721_v52, %v582_v49 }
 0x110   :  { %v558_v60 = vpop.f32.mrf.mxu0  ;;  %v2392_v61 = vpop.f32.mrf.mxu1 }
 0x111   :  { %v583_v62 = vadd.f32 %v558_v60, %v416_v53  ;;  %756 = vst [vmem:[#allocation2 + $0x20] sm:$0xff] %v748_v59  ;;  %v751_v63 = vadd.f32 %v2392_v61, %v585_v54 }
 0x112   :  { %v724_v0 = vpop.f32.mrf.mxu1 }
 0x113   :  { %759 = vst [vmem:[#allocation2 + $0x38] sm:$0xff] %v751_v63  ;;  %v749_v1 = vadd.f32 %v724_v0, %v583_v62 }
 0x115   :  { %757 = vst [vmem:[#allocation2 + $0x28] sm:$0xff] %v749_v1 }
 0x116 LB: > { %v2541_v2 = vld [vmem:[%s3135_s3 + $0x78] sm:$0xff]   ;;  %v2545_v6 = vld [vmem:[%s3135_s3 + $0x70] sm:$0xff]   ;;  %v2549_v10 = vld [vmem:[%s3135_s3 + $0x68] sm:$0xff]   ;;  %v1121_v42 = vlaneseq  ;;  %s2070_s26 = sshll.u32 %s2615_s2, 3  ;;  %s769_s2 = sadd.s32 1, %s2615_s2   ;;  %s2615_s2 = sphi %s2856_s2, %s769_s2  }
 0x117   : > { %v2542_v3 = vld [vmem:[%s3135_s3 + $0xf8] sm:$0xff]   ;;  %2205 = vmatprep.subr.bf16.mxu0 %v2541_v2  ;;  %v2546_v7 = vld [vmem:[%s3135_s3 + $0xf0] sm:$0xff]   ;;  %v2550_v11 = vld [vmem:[%s3135_s3 + $0xe8] sm:$0xff]   ;;  %s1115_s1 = scalar_lea.vmem [#allocation2], %s2070_s26  ;;  %s1916_s27 = scalar_lea.vmem [#allocation3], %s2070_s26 }
 0x118   : > { %v2543_v4 = vld [vmem:[%s3135_s3 + $0x38] sm:$0xff]   ;;  %2227 = vmatprep.subr.bf16.mxu1 %v2542_v3  ;;  %v2547_v8 = vld [vmem:[%s3135_s3 + $0x30] sm:$0xff]   ;;  %v2551_v12 = vld [vmem:[%s3135_s3 + $0x28] sm:$0xff]   ;;  %v1122_v43 = vshrl.u32 %v1121_v42, 7  ;;  %p766_p0 = scmp.ge.s32.totalorder %s769_s2, 8  }
 0x119   : > { %v2544_v5 = vld [vmem:[%s3135_s3 + $0xb8] sm:$0xff]   ;;  %2206 = vmatpush3.bf16.msra.mxu0 %v2543_v4  ;;  %v2548_v9 = vld [vmem:[%s3135_s3 + $0xb0] sm:$0xff]   ;;  %v2552_v13 = vld [vmem:[%s3135_s3 + $0xa8] sm:$0xff]  }
 0x11a   : > { %2228 = vmatpush3.bf16.msra.mxu1 %v2544_v5  ;;  %2207 = vmatprep.subr.bf16.mxu0 %v2545_v6  ;;  %v2553_v14 = vld [vmem:[%s3135_s3 + $0x60] sm:$0xff]   ;;  %v2557_v18 = vld [vmem:[%s3135_s3 + $0x58] sm:$0xff]   ;;  %v2561_v22 = vld [vmem:[%s3135_s3 + $0x50] sm:$0xff]   ;;  %v2958_v44 = vsub.s32 0, %v1122_v43 }
 0x11b   : > { %2229 = vmatprep.subr.bf16.mxu1 %v2546_v7  ;;  %v2554_v15 = vld [vmem:[%s3135_s3 + $0xe0] sm:$0xff]   ;;  %v2558_v19 = vld [vmem:[%s3135_s3 + $0xd8] sm:$0xff]   ;;  %v2562_v23 = vld [vmem:[%s3135_s3 + $0xd0] sm:$0xff]  }
 0x11c   : > { %v2555_v16 = vld [vmem:[%s3135_s3 + $0x20] sm:$0xff]   ;;  %v2559_v20 = vld [vmem:[%s3135_s3 + $0x18] sm:$0xff]   ;;  %v2563_v24 = vld [vmem:[%s3135_s3 + $0x10] sm:$0xff]   ;;  %v1124_v52 = vrot.slane %v2841_v55, %v2958_v44  ;;  %v1131_v62 = vrot.slane %v762_v57, %v2958_v44  ;;  %v1148_v7 = vrot.slane %v2846_v56, %v2958_v44 }
 0x11d   : > { %2208 = vmatpush3.bf16.msra.mxu0 %v2547_v8  ;;  %v2556_v17 = vld [vmem:[%s3135_s3 + $0xa0] sm:$0xff]   ;;  %v2560_v21 = vld [vmem:[%s3135_s3 + $0x98] sm:$0xff]   ;;  %v2564_v25 = vld [vmem:[%s3135_s3 + $0x90] sm:$0xff]  }
 0x11e   : > { %2230 = vmatpush3.bf16.msra.mxu1 %v2548_v9  ;;  %2209 = vmatprep.subr.bf16.mxu0 %v2549_v10  ;;  %v2565_v26 = vld [vmem:[%s3135_s3 + $0x48] sm:$0xff]   ;;  %v2569_v30 = vld [vmem:[%s3135_s3 + $0x40] sm:$0xff]   ;;  %v771_v34 = vld [vmem:[#allocation4] sm:$0xff]  ;;  %v1155_v9 = vrot.slane %v763_v58, %v2958_v44 }
 0x11f   : > { %2231 = vmatprep.subr.bf16.mxu1 %v2550_v11  ;;  %v2566_v27 = vld [vmem:[%s3135_s3 + $0xc8] sm:$0xff]   ;;  %v2570_v31 = vld [vmem:[%s3135_s3 + $0xc0] sm:$0xff]   ;;  %v775_v37 = vpack.c.bf16 %v771_v34, %v771_v34  ;;  %v1166_v39 = vld [vmem:[#allocation4 + $0x18] sm:$0xff]  ;;  %v2623_v11 = vmov 0.0  }
 0x120   : > { %v2567_v28 = vld [vmem:[%s3135_s3 + $0x8] sm:$0xff]   ;;  %v2571_v32 = vld [vmem:[%s3135_s3] sm:$0xff]   ;;  %v776_v41 = vpack.c.bf16 %v1166_v39, %v1166_v39  ;;  %1169 = vst [vmem:[#allocation4 + $0x18] sm:$0xff] %v771_v34  ;;  %v1119_v54 = vld [vmem:[#allocation6] sm:$0xff] }
 0x121   : > { %2210 = vmatpush3.bf16.msra.mxu0 %v2551_v12  ;;  %v2568_v29 = vld [vmem:[%s3135_s3 + $0x88] sm:$0xff]   ;;  %v2572_v33 = vld [vmem:[%s3135_s3 + $0x80] sm:$0xff]   ;;  %1066 = vmatprep.mubr.bf16.mxu0 %v775_v37  ;;  %v1126_v3 = vmul.f32 %v1124_v52, %v1119_v54  ;;  %v2577_v55 = vld [vmem:[%s3136_s5 + $0x70] sm:$0xff] (%p766_p0)  }
 0x122   : > { %2232 = vmatpush3.bf16.msra.mxu1 %v2552_v13  ;;  %2211 = vmatprep.subr.bf16.mxu0 %v2553_v14  ;;  %v1164_v35 = vld [vmem:[#allocation4 + $0x10] sm:$0xff]  ;;  %v773_v36 = vld [vmem:[#allocation4 + $0x8] sm:$0xff]  ;;  %v2590_v42 = vld [vmem:[%s3136_s5 + $0xb0] sm:$0xff] (%p766_p0)  }
 0x123   : > { %2233 = vmatprep.subr.bf16.mxu1 %v2554_v15  ;;  %1168 = vst [vmem:[#allocation4] sm:$0xff] %v1164_v35  ;;  %v777_v38 = vpack.c.bf16 %v773_v36, %v773_v36  ;;  %v774_v40 = vpack.c.bf16 %v1164_v35, %v1164_v35  ;;  %1170 = vst [vmem:[#allocation4 + $0x8] sm:$0xff] %v1166_v39  ;;  %v1118_v49 = vld [vmem:[#allocation7] sm:$0xff]  ;;  %v2579_v56 = vld [vmem:[%s3136_s5 + $0x68] sm:$0xff] (%p766_p0)  }
 0x124   : > { %v1116_v53 = vld [vmem:[%s1115_s1] sm:$0xff]  ;;  %v1135_v63 = vmul.f32 1.8, %v1118_v49  ;;  %v1150_v10 = vmul.f32 %v1148_v7, %v1118_v49  ;;  %v2589_v36 = vld [vmem:[%s3136_s5 + $0xb8] sm:$0xff] (%p766_p0)   ;;  %v2592_v49 = vld [vmem:[%s3136_s5 + $0xa8] sm:$0xff] (%p766_p0)  }
 0x125   : > { %2212 = vmatpush3.bf16.msra.mxu0 %v2555_v16  ;;  %1106 = vmatprep.mubr.bf16.mxu1 %v777_v38  ;;  %v2578_v57 = vld [vmem:[%s3136_s5 + $0x20] sm:$0xff] (%p766_p0)  }
 0x126   : > { %2234 = vmatpush3.bf16.msra.mxu1 %v2556_v17  ;;  %2213 = vmatprep.subr.bf16.mxu0 %v2557_v18  ;;  %v1136_v5 = vadd.f32 0.2, %v1135_v63  ;;  %v2573_v17 = vld [vmem:[%s3136_s5 + $0x38] sm:$0xff] (%p766_p0)   ;;  %v2574_v18 = vld [vmem:[%s3136_s5 + $0x30] sm:$0xff] (%p766_p0)   ;;  %v2581_v58 = vld [vmem:[%s3136_s5 + $0x60] sm:$0xff] (%p766_p0)  }
 0x127   : > { %2235 = vmatprep.subr.bf16.mxu1 %v2558_v19  ;;  %v2575_v19 = vld [vmem:[%s3136_s5 + $0x78] sm:$0xff] (%p766_p0)   ;;  %v2588_v35 = vld [vmem:[%s3136_s5 + $0x40] sm:$0xff] (%p766_p0)  }
 0x128   :  { %v2596_v63 = vld [vmem:[%s3136_s5 + $0x98] sm:$0xff] (%p766_p0)   ;;  %v3100_v7 = vld [vmem:[%s3138_s9] sm:$0x1] (%p766_p0) }
 0x129   : > { %2214 = vmatpush3.bf16.msra.mxu0 %v2559_v20  ;;  %v2576_v20 = vld [vmem:[%s3136_s5 + $0x28] sm:$0xff] (%p766_p0)  }
 0x12a   : > { %2236 = vmatpush3.bf16.msra.mxu1 %v2560_v21  ;;  %2215 = vmatprep.subr.bf16.mxu0 %v2561_v22  ;;  %v2580_v21 = vld [vmem:[%s3136_s5 + $0x18] sm:$0xff] (%p766_p0)  }
 0x12b   : > { %2237 = vmatprep.subr.bf16.mxu1 %v2562_v23  ;;  %v2583_v22 = vld [vmem:[%s3136_s5 + $0x58] sm:$0xff] (%p766_p0)  }
 0x12d   : > { %2216 = vmatpush3.bf16.msra.mxu0 %v2563_v24 }
 0x12e   : > { %2238 = vmatpush3.bf16.msra.mxu1 %v2564_v25  ;;  %2217 = vmatprep.subr.bf16.mxu0 %v2565_v26  ;;  %v2582_v25 = vld [vmem:[%s3136_s5 + $0x10] sm:$0xff] (%p766_p0)  }
 0x12f   : > { %2239 = vmatprep.subr.bf16.mxu1 %v2566_v27  ;;  %v2585_v27 = vld [vmem:[%s3136_s5 + $0x50] sm:$0xff] (%p766_p0)  }
 0x131   : > { %2218 = vmatpush3.bf16.msra.mxu0 %v2567_v28 }
 0x132   : > { %2240 = vmatpush3.bf16.msra.mxu1 %v2568_v29  ;;  %2219 = vmatprep.subr.bf16.mxu0 %v2569_v30  ;;  %v2584_v30 = vld [vmem:[%s3136_s5 + $0x8] sm:$0xff] (%p766_p0)  }
 0x133   : > { %2241 = vmatprep.subr.bf16.mxu1 %v2570_v31  ;;  %v2587_v31 = vld [vmem:[%s3136_s5 + $0x48] sm:$0xff] (%p766_p0)  }
 0x135   : > { %2220 = vmatpush3.bf16.msra.mxu0 %v2571_v32  ;;  %v2586_v32 = vld [vmem:[%s3136_s5] sm:$0xff] (%p766_p0)  }
 0x136   : > { %2242 = vmatpush3.bf16.msra.mxu1 %v2572_v33  ;;  %2393 = vmatprep.subr.bf16.mxu0 (%p766_p0), %v2573_v17 }
 0x137   :  { %2417 = vmatprep.subr.bf16.mxu1 (%p766_p0), %v2575_v19 }
 0x138   : > { %1067 = vmatmul.mubr.bf16.vlgmr.msra.gmra.mxu0 %v774_v40  ;;  %v2591_v40 = vld [vmem:[%s3136_s5 + $0xf8] sm:$0xff] (%p766_p0)  }
 0x139   : > { %1107 = vmatmul.mubr.bf16.vlgmr.msra.gmra.mxu1 %v776_v41  ;;  %2394 = vmatpush3.bf16.msra.mxu0 (%p766_p0), %v2573_v17 }
 0x13a   :  { %2395 = vmatprep.subr.bf16.mxu0 (%p766_p0), %v2574_v18  ;;  %2418 = vmatpush3.bf16.msra.mxu1 (%p766_p0), %v2575_v19 }
 0x13b   :  { %2419 = vmatprep.subr.bf16.mxu1 (%p766_p0), %v2577_v55 }
 0x13d   :  { %2396 = vmatpush3.bf16.msra.mxu0 (%p766_p0), %v2574_v18 }
 0x13e   :  { %2397 = vmatprep.subr.bf16.mxu0 (%p766_p0), %v2576_v20  ;;  %2420 = vmatpush3.bf16.msra.mxu1 (%p766_p0), %v2577_v55 }
 0x13f   :  { %2421 = vmatprep.subr.bf16.mxu1 (%p766_p0), %v2579_v56 }
 0x141   :  { %2398 = vmatpush3.bf16.msra.mxu0 (%p766_p0), %v2576_v20 }
 0x142   :  { %2399 = vmatprep.subr.bf16.mxu0 (%p766_p0), %v2578_v57  ;;  %2422 = vmatpush3.bf16.msra.mxu1 (%p766_p0), %v2579_v56  ;;  %v2074_v56 = vld [vmem:[%s3137_s6] ss:$0 sm:$0xff] (%p766_p0)  ;;  %s3112_s6 = smov (%p766_p0), 0  }
 0x143   :  { %2423 = vmatprep.subr.bf16.mxu1 (%p766_p0), %v2581_v58 }
 0x145   :  { %2400 = vmatpush3.bf16.msra.mxu0 (%p766_p0), %v2578_v57 }
 0x146   :  { %2401 = vmatprep.subr.bf16.mxu0 (%p766_p0), %v2580_v21  ;;  %2424 = vmatpush3.bf16.msra.mxu1 (%p766_p0), %v2581_v58 }
 0x147   :  { %2425 = vmatprep.subr.bf16.mxu1 (%p766_p0), %v2583_v22 }
 0x149   :  { %2402 = vmatpush3.bf16.msra.mxu0 (%p766_p0), %v2580_v21 }
 0x14a   :  { %2403 = vmatprep.subr.bf16.mxu0 (%p766_p0), %v2582_v25  ;;  %2426 = vmatpush3.bf16.msra.mxu1 (%p766_p0), %v2583_v22 }
 0x14b   :  { %2427 = vmatprep.subr.bf16.mxu1 (%p766_p0), %v2585_v27 }
 0x14d   :  { %2404 = vmatpush3.bf16.msra.mxu0 (%p766_p0), %v2582_v25 }
 0x14e   :  { %2405 = vmatprep.subr.bf16.mxu0 (%p766_p0), %v2584_v30  ;;  %2428 = vmatpush3.bf16.msra.mxu1 (%p766_p0), %v2585_v27 }
 0x14f   :  { %2429 = vmatprep.subr.bf16.mxu1 (%p766_p0), %v2587_v31 }
 0x151   :  { %2406 = vmatpush3.bf16.msra.mxu0 (%p766_p0), %v2584_v30 }
 0x152   :  { %2407 = vmatprep.subr.bf16.mxu0 (%p766_p0), %v2586_v32  ;;  %2430 = vmatpush3.bf16.msra.mxu1 (%p766_p0), %v2587_v31 }
 0x153   :  { %2431 = vmatprep.subr.bf16.mxu1 (%p766_p0), %v2588_v35 }
 0x155   :  { %2408 = vmatpush3.bf16.msra.mxu0 (%p766_p0), %v2586_v32 }
 0x156   :  { %2441 = vmatprep.subr.bf16.mxu0 (%p766_p0), %v2589_v36  ;;  %2432 = vmatpush3.bf16.msra.mxu1 (%p766_p0), %v2588_v35 }
 0x157   :  { %2465 = vmatprep.subr.bf16.mxu1 (%p766_p0), %v2591_v40 }
 0x1f8   : > { %v2221_v45 = vpop.f32.mrf.mxu0 }
 0x1f9   : > { %v2243_v46 = vpop.f32.mrf.mxu1 }
 0x1fa   : > { %v2222_v47 = vpop.f32.mrf.mxu0 }
 0x1fb   : > { %v2244_v48 = vpop.f32.mrf.mxu1  ;;  %v2223_v50 = vadd.f32 %v2222_v47, %v2221_v45 }
 0x1fc   : > { %v2245_v51 = vadd.f32 %v2244_v48, %v2243_v46  ;;  %v2224_v59 = vpop.f32.mrf.mxu0  ;;  %v2593_v46 = vld [vmem:[%s3136_s5 + $0xf0] sm:$0xff] (%p766_p0)  }
 0x1fd   : > { %v2246_v60 = vpop.f32.mrf.mxu1  ;;  %v2594_v59 = vld [vmem:[%s3136_s5 + $0xa0] sm:$0xff] (%p766_p0)  }
 0x1fe   : > { %v1109_v61 = vadd.f32 %v2245_v51, %v2223_v50  ;;  %v2225_v0 = vpop.f32.mrf.mxu0  ;;  %v2595_v51 = vld [vmem:[%s3136_s5 + $0xe8] sm:$0xff] (%p766_p0)  }
 0x1ff   : > { %v2247_v1 = vpop.f32.mrf.mxu1  ;;  %v2599_v0 = vld [vmem:[%s3136_s5 + $0xd8] sm:$0xff] (%p766_p0)  }
 0x200   : > { %v1117_v2 = vadd.f32 %v1116_v53, %v1109_v61  ;;  %v2598_v1 = vld [vmem:[%s3136_s5 + $0x90] sm:$0xff] (%p766_p0)  }
 0x202   : > { %v1133_v4 = vmul.f32 %v1131_v62, %v1117_v2  ;;  %v2597_v62 = vld [vmem:[%s3136_s5 + $0xe0] sm:$0xff] (%p766_p0)   ;;  %v2601_v2 = vld [vmem:[%s3136_s5 + $0xd0] sm:$0xff] (%p766_p0)  }
 0x204   : > { %v1134_v6 = vadd.f32 %v1133_v4, %v1126_v3  ;;  %v2600_v3 = vld [vmem:[%s3136_s5 + $0x88] sm:$0xff] (%p766_p0)  }
 0x205   :  { %v2603_v4 = vld [vmem:[%s3136_s5 + $0xc8] sm:$0xff] (%p766_p0)  }
 0x206   : > { %v1137_v8 = vsub.f32 %v1134_v6, %v1136_v5 }
 0x208   : > { %vm1138_vm0 = vcmp.gt.f32.partialorder %v1137_v8, 0.0  ;;  %v3105_v8 = vld [vmem:[%s3139_s10] sm:$0x1] (%p766_p0) }
 0x209   : > { %v2071_v12 = vsel %vm1138_vm0, 1.0, %v2623_v11 }
 0x20a   : > { %v1141_v13 = vmul.f32 %v2071_v12, %v1136_v5  ;;  %v1157_v14 = vmul.f32 %v2071_v12, %v1155_v9  ;;  %2073 = vst [vmem:[%s1916_s27 + $0x18] sm:$0xff] %v2071_v12  ;;  %1167 = vst [vmem:[#allocation4 + $0x10] sm:$0xff] %v2071_v12  ;;  %768 = sbr.rel (!%p766_p0) target bundleno = 278 (0x116), region = 95  ;;  %v2602_v5 = vld [vmem:[%s3136_s5 + $0x80] sm:$0xff] (%p766_p0)   ;;  %v1854_v9 = vsub.f32 (%p766_p0), 1.0, %v3100_v7 }
 0x20c   : > { %v1142_v15 = vsub.f32 %v1134_v6, %v1141_v13  ;;  %v1158_v16 = vadd.f32 %v1157_v14, %v1150_v10  ;;  %v2604_v6 = vld [vmem:[%s3136_s5 + $0xc0] sm:$0xff] (%p766_p0)   ;;  %v1855_v10 = vsub.f32 (%p766_p0), 1.0, %v3105_v8 }
 0x20e   : > { %1143 = vst [vmem:[#allocation6] sm:$0xff] %v1142_v15  ;;  %1159 = vst [vmem:[#allocation7] sm:$0xff] %v1158_v16 }
 0x211   :  { %v1187_v23 = vld [vmem:[#allocation3 + $0x18] sm:$0xff]  ;;  %v1188_v24 = vld [vmem:[#allocation3 + $0x20] sm:$0xff]  ;;  %v1353_v28 = vld [vmem:[#allocation3 + $0x10] sm:$0xff] }
 0x212   :  { %v3010_v26 = vpack.c.bf16 %v1188_v24, %v1187_v23  ;;  %v3016_v29 = vpack.c.bf16 %v1187_v23, %v1353_v28  ;;  %v1189_v33 = vld [vmem:[#allocation3 + $0x28] sm:$0xff]  ;;  %v1190_v34 = vld [vmem:[#allocation3 + $0x30] sm:$0xff]  ;;  %v1191_v37 = vld [vmem:[#allocation3 + $0x38] sm:$0xff] }
 0x213   :  { %v1192_v38 = vld [vmem:[#allocation3 + $0x40] sm:$0xff]  ;;  %v3034_v39 = vpack.c.bf16 %v1190_v34, %v1189_v33  ;;  %v3044_v43 = vpack.c.bf16 %v1189_v33, %v1188_v24  ;;  %v3046_v45 = vpack.c.bf16 %v1191_v37, %v1190_v34  ;;  %v1193_v47 = vld [vmem:[#allocation3 + $0x48] sm:$0xff]  ;;  %v1194_v48 = vld [vmem:[#allocation3 + $0x50] sm:$0xff] }
 0x214   :  { %2409 = vmatprep.mubr.bf16.mxu0 %v3010_v26  ;;  %2433 = vmatprep.mubr.bf16.mxu1 %v3016_v29  ;;  %v3039_v41 = vpack.c.bf16 %v1192_v38, %v1191_v37  ;;  %v1520_v50 = vld [vmem:[#allocation3 + $0x8] sm:$0xff]  ;;  %v1198_v52 = vpack.c.bf16 %v1194_v48, %v1193_v47  ;;  %v1686_v53 = vld [vmem:[#allocation3] sm:$0xff]  ;;  %v1364_v60 = vpack.c.bf16 %v1193_v47, %v1192_v38 }
 0x215   :  { %2410 = vmatmul.mubr.bf16.vlgmr.msra.gmra.mxu0 %v3034_v39  ;;  %2434 = vmatmul.mubr.bf16.vlgmr.msra.gmra.mxu1 %v3044_v43  ;;  %v1528_v54 = vpack.c.bf16 %v1353_v28, %v1520_v50  ;;  %v1694_v61 = vpack.c.bf16 %v1520_v50, %v1686_v53 }
 0x216   :  { %2442 = vmatpush3.bf16.msra.mxu0 %v2589_v36  ;;  %2413 = vmatprep.mubr.bf16.mxu0 %v3039_v41 }
 0x217   :  { %2443 = vmatprep.subr.bf16.mxu0 %v2590_v42  ;;  %2466 = vmatpush3.bf16.msra.mxu1 %v2591_v40 }
 0x218   :  { %2437 = vmatprep.mubr.bf16.mxu1 %v3046_v45  ;;  %2467 = vmatprep.subr.bf16.mxu1 %v2593_v46 }
 0x21a   :  { %2444 = vmatpush3.bf16.msra.mxu0 %v2590_v42 }
 0x21b   :  { %2445 = vmatprep.subr.bf16.mxu0 %v2592_v49  ;;  %2468 = vmatpush3.bf16.msra.mxu1 %v2593_v46 }
 0x21c   :  { %2469 = vmatprep.subr.bf16.mxu1 %v2595_v51 }
 0x21d   :  { %2414 = vmatmul.mubr.bf16.gmra.mxu0 %v1198_v52  ;;  %2438 = vmatmul.mubr.bf16.gmra.mxu1 %v1364_v60 }
 0x21e   :  { %2446 = vmatpush3.bf16.msra.mxu0 %v2592_v49  ;;  %2457 = vmatprep.mubr.bf16.mxu0 %v1528_v54 }
 0x21f   :  { %2447 = vmatprep.subr.bf16.mxu0 %v2594_v59  ;;  %2470 = vmatpush3.bf16.msra.mxu1 %v2595_v51 }
 0x220   :  { %2481 = vmatprep.mubr.bf16.mxu1 %v1694_v61  ;;  %2471 = vmatprep.subr.bf16.mxu1 %v2597_v62 }
 0x222   :  { %2448 = vmatpush3.bf16.msra.mxu0 %v2594_v59 }
 0x223   :  { %2449 = vmatprep.subr.bf16.mxu0 %v2596_v63  ;;  %2472 = vmatpush3.bf16.msra.mxu1 %v2597_v62 }
 0x224   :  { %2473 = vmatprep.subr.bf16.mxu1 %v2599_v0 }
 0x226   :  { %2450 = vmatpush3.bf16.msra.mxu0 %v2596_v63 }
 0x227   :  { %2451 = vmatprep.subr.bf16.mxu0 %v2598_v1  ;;  %2474 = vmatpush3.bf16.msra.mxu1 %v2599_v0 }
 0x228   :  { %2475 = vmatprep.subr.bf16.mxu1 %v2601_v2 }
 0x22a   :  { %2452 = vmatpush3.bf16.msra.mxu0 %v2598_v1 }
 0x22b   :  { %2453 = vmatprep.subr.bf16.mxu0 %v2600_v3  ;;  %2476 = vmatpush3.bf16.msra.mxu1 %v2601_v2 }
 0x22c   :  { %2477 = vmatprep.subr.bf16.mxu1 %v2603_v4 }
 0x22e   :  { %2454 = vmatpush3.bf16.msra.mxu0 %v2600_v3 }
 0x22f   :  { %2455 = vmatprep.subr.bf16.mxu0 %v2602_v5  ;;  %2478 = vmatpush3.bf16.msra.mxu1 %v2603_v4 }
 0x230   :  { %2479 = vmatprep.subr.bf16.mxu1 %v2604_v6 }
 0x232   :  { %2456 = vmatpush3.bf16.msra.mxu0 %v2602_v5 }
 0x233   :  { %2480 = vmatpush3.bf16.msra.mxu1 %v2604_v6 }
 0x235   :  { %2458 = vmatmul.mubr.bf16.vlgmr.msra.gmra.mxu0 %v3010_v26 }
 0x236   :  { %2461 = vmatprep.mubr.bf16.mxu0 %v3034_v39  ;;  %2482 = vmatmul.mubr.bf16.vlgmr.msra.gmra.mxu1 %v3016_v29 }
 0x237   :  { %2485 = vmatprep.mubr.bf16.mxu1 %v3044_v43 }
 0x23d   :  { %2462 = vmatmul.mubr.bf16.gmra.mxu0 %v3039_v41 }
 0x23e   :  { %2486 = vmatmul.mubr.bf16.gmra.mxu1 %v3046_v45 }
 0x2d5   :  { %v2411_v11 = vpop.f32.mrf.mxu0  ;;  %v2435_v12 = vpop.f32.mrf.mxu1 }
 0x2d6   :  { %v1338_v21 = vadd.f32 %v2411_v11, %v2074_v56 }
 0x2d7   :  { %v1297_v13 = vpop.f32.mrf.mxu0  ;;  %v1464_v14 = vpop.f32.mrf.mxu1 }
 0x2d8   :  { %v1336_v23 = vadd.f32 %v2074_v56, %v1297_v13  ;;  %v1505_v26 = vadd.f32 %v2435_v12, %v1338_v21 }
 0x2d9   :  { %v2412_v15 = vpop.f32.mrf.mxu0  ;;  %v2436_v16 = vpop.f32.mrf.mxu1 }
 0x2da   :  { %v1339_v25 = vadd.f32 %v2412_v15, %v2074_v56  ;;  %v1503_v30 = vadd.f32 %v1464_v14, %v1336_v23 }
 0x2db   :  { %v1300_v17 = vpop.f32.mrf.mxu0  ;;  %v1467_v18 = vpop.f32.mrf.mxu1 }
 0x2dc   :  { %v1337_v29 = vadd.f32 %v2074_v56, %v1300_v17  ;;  %v1506_v34 = vadd.f32 %v2436_v16, %v1339_v25 }
 0x2dd   :  { %v2415_v19 = vpop.f32.mrf.mxu0  ;;  %v2439_v20 = vpop.f32.mrf.mxu1 }
 0x2de   :  { %v1342_v35 = vadd.f32 %v2415_v19, %v2074_v56  ;;  %v1504_v40 = vadd.f32 %v1467_v18, %v1337_v29 }
 0x2df   :  { %v1313_v55 = vpop.f32.mrf.mxu0  ;;  %v1480_v57 = vpop.f32.mrf.mxu1 }
 0x2e0   :  { %v1340_v41 = vadd.f32 %v2074_v56, %v1313_v55  ;;  %v1509_v48 = vadd.f32 %v2439_v20, %v1342_v35 }
 0x2e1   :  { %v2416_v58 = vpop.f32.mrf.mxu0  ;;  %v2440_v22 = vpop.f32.mrf.mxu1 }
 0x2e2   :  { %v1343_v47 = vadd.f32 %v2416_v58, %v2074_v56  ;;  %v1507_v54 = vadd.f32 %v1480_v57, %v1340_v41 }
 0x2e3   :  { %v1316_v24 = vpop.f32.mrf.mxu0  ;;  %v1483_v27 = vpop.f32.mrf.mxu1 }
 0x2e4   :  { %v1341_v53 = vadd.f32 %v2074_v56, %v1316_v24  ;;  %v1510_v63 = vadd.f32 %v2440_v22, %v1343_v47 }
 0x2e6   :  { %v1508_v4 = vadd.f32 %v1483_v27, %v1341_v53 }
 0x2f5   :  { %v2459_v28 = vpop.f32.mrf.mxu0 }
 0x2f6   :  { %v1672_v31 = vadd.f32 %v2459_v28, %v1505_v26  ;;  %v2483_v33 = vpop.f32.mrf.mxu1 }
 0x2f7   :  { %v1631_v32 = vpop.f32.mrf.mxu0 }
 0x2f8   :  { %v1670_v36 = vadd.f32 %v1631_v32, %v1503_v30  ;;  %v1838_v37 = vadd.f32 %v2483_v33, %v1672_v31  ;;  %v1797_v39 = vpop.f32.mrf.mxu1 }
 0x2f9   :  { %v2460_v38 = vpop.f32.mrf.mxu0 }
 0x2fa   :  { %v1673_v42 = vadd.f32 %v2460_v38, %v1506_v34  ;;  %1846 = vst [vmem:[#allocation5 + $0x10] sm:$0xff] %v1838_v37  ;;  %v1836_v43 = vadd.f32 %v1797_v39, %v1670_v36  ;;  %v2484_v46 = vpop.f32.mrf.mxu1 }
 0x2fb   :  { %v1634_v45 = vpop.f32.mrf.mxu0 }
 0x2fc   :  { %v1671_v49 = vadd.f32 %v1634_v45, %v1504_v40  ;;  %1844 = vst [vmem:[#allocation5] sm:$0xff] %v1836_v43  ;;  %v1839_v50 = vadd.f32 %v2484_v46, %v1673_v42  ;;  %v1800_v52 = vpop.f32.mrf.mxu1 }
 0x2fd   :  { %v2463_v51 = vpop.f32.mrf.mxu0 }
 0x2fe   :  { %v1676_v59 = vadd.f32 %v2463_v51, %v1509_v48  ;;  %1847 = vst [vmem:[#allocation5 + $0x18] sm:$0xff] %v1839_v50  ;;  %v1837_v60 = vadd.f32 %v1800_v52, %v1671_v49  ;;  %v2487_v62 = vpop.f32.mrf.mxu1 }
 0x2ff   :  { %v1647_v61 = vpop.f32.mrf.mxu0 }
 0x300   :  { %v1674_v0 = vadd.f32 %v1647_v61, %v1507_v54  ;;  %1845 = vst [vmem:[#allocation5 + $0x8] sm:$0xff] %v1837_v60  ;;  %v1842_v1 = vadd.f32 %v2487_v62, %v1676_v59  ;;  %v1813_v3 = vpop.f32.mrf.mxu1 }
 0x301   :  { %v2464_v2 = vpop.f32.mrf.mxu0 }
 0x302   :  { %v1677_v5 = vadd.f32 %v2464_v2, %v1510_v63  ;;  %1850 = vst [vmem:[#allocation5 + $0x30] sm:$0xff] %v1842_v1  ;;  %v1840_v6 = vadd.f32 %v1813_v3, %v1674_v0  ;;  %v2488_v12 = vpop.f32.mrf.mxu1 }
 0x303   :  { %v1650_v11 = vpop.f32.mrf.mxu0 }
 0x304   :  { %v1675_v13 = vadd.f32 %v1650_v11, %v1508_v4  ;;  %1848 = vst [vmem:[#allocation5 + $0x20] sm:$0xff] %v1840_v6  ;;  %v1843_v14 = vadd.f32 %v2488_v12, %v1677_v5  ;;  %v1816_v15 = vpop.f32.mrf.mxu1 }
 0x306   :  { %1851 = vst [vmem:[#allocation5 + $0x38] sm:$0xff] %v1843_v14  ;;  %v1841_v16 = vadd.f32 %v1816_v15, %v1675_v13 }
 0x308   :  { %1849 = vst [vmem:[#allocation5 + $0x28] sm:$0xff] %v1841_v16 }
 0x309 LB: > { %v1865_v17 = vld [vmem:[#allocation9] sm:$0xff]  ;;  %v1866_v18 = vld [vmem:[#allocation8] sm:$0xff]  ;;  %v1871_v19 = vrot.slane %v3100_v7, %v2958_v44  ;;  %v1878_v20 = vrot.slane %v1854_v9, %v2958_v44  ;;  %s2155_s10 = sshll.u32 %s2619_s6, 3  ;;  %v1895_v23 = vrot.slane %v3105_v8, %v2958_v44  ;;  %v1902_v25 = vrot.slane %v1855_v10, %v2958_v44  ;;  %s1861_s6 = sadd.s32 1, %s2619_s6   ;;  %s2619_s6 = sphi %s3112_s6, %s1861_s6  }
 0x30a   : > { %v1882_v55 = vmul.f32 1.8, %v1865_v17  ;;  %s1863_s19 = scalar_lea.vmem [#allocation5], %s2155_s10  ;;  %s1907_s22 = scalar_lea.vmem %s3140_s11, %s2155_s10  ;;  %v2624_v27 = vmov 0.0  }
 0x30b   : > { %v1873_v56 = vmul.f32 %v1871_v19, %v1866_v18  ;;  %v1897_v26 = vmul.f32 %v1895_v23, %v1865_v17  ;;  %p1858_p1 = scmp.ge.s32.totalorder %s1861_s6, 8  }
 0x30c   : > { %v1883_v21 = vadd.f32 0.2, %v1882_v55 }
 0x30f   : > { %v1864_v57 = vld [vmem:[%s1863_s19] sm:$0xff] }
 0x310   : > { %v1880_v58 = vmul.f32 %v1878_v20, %v1864_v57 }
 0x312   : > { %v1881_v22 = vadd.f32 %v1880_v58, %v1873_v56 }
 0x314   : > { %v1884_v24 = vsub.f32 %v1881_v22, %v1883_v21 }
 0x316   : > { %vm1885_vm1 = vcmp.gt.f32.partialorder %v1884_v24, 0.0 }
 0x317   : > { %v2156_v28 = vsel %vm1885_vm1, 1.0, %v2624_v27 }
 0x318   : > { %v1888_v29 = vmul.f32 %v2156_v28, %v1883_v21  ;;  %v1904_v30 = vmul.f32 %v2156_v28, %v1902_v25  ;;  %1908 = vst [vmem:[%s1907_s22] sm:$0xff] %v2156_v28  ;;  %1860 = sbr.rel (!%p1858_p1) target bundleno = 777 (0x309), region = 106 }
 0x31a   : > { %v1889_v31 = vsub.f32 %v1881_v22, %v1888_v29  ;;  %v1905_v32 = vadd.f32 %v1904_v30, %v1897_v26 }
 0x31c   : > { %1890 = vst [vmem:[#allocation8] sm:$0xff] %v1889_v31  ;;  %1906 = vst [vmem:[#allocation9] sm:$0xff] %v1905_v32 }

</bundles_post_ra>
